<compile_context>
chip_gen: v6e
topology: v6e:2x2x1
jax: 0.10.0
libtpu: 0.0.40
codegen_flags: <defaults>
</compile_context>

<pallas_src>
import functools

import jax
import jax.numpy as jnp
from jax.experimental import pallas as pl
from jax.experimental.pallas import tpu as pltpu

EPS = 1e-5
_MAX_TILE_B = 1024   # max lanes per batch tile (multiple of 128)


def _covid19_kernel(x_ref,
                    w1_ref, b1_ref, g1_ref, be1_ref,
                    w2_ref, b2_ref, g2_ref, be2_ref,
                    w3_ref, b3_ref,
                    o_ref,
                    sum1, sumsq1, sum2, sumsq2,
                    *, batch, tile_b):
    p = pl.program_id(0)   # phase axis (0: stats1, 1: stats2, 2: finalize)
    i = pl.program_id(1)   # batch-tile axis

    @pl.when((p == 0) & (i == 0))
    def _init():
        sum1[...] = jnp.zeros_like(sum1)
        sumsq1[...] = jnp.zeros_like(sumsq1)
        sum2[...] = jnp.zeros_like(sum2)
        sumsq2[...] = jnp.zeros_like(sumsq2)

    inv_n = jnp.float32(1.0 / batch)

    # Valid-row mask over the lane (batch) axis: padded rows excluded from BN stats.
    lane = jax.lax.broadcasted_iota(jnp.int32, (1, tile_b), 1)
    mask = ((lane + i * tile_b) < batch).astype(jnp.float32)          # (1, TB)

    xT = x_ref[...]                                                   # (D, TB)

    # ---- Layer 1: Linear(D, 64) + ReLU (batch on lanes) ----
    h1 = jnp.maximum(
        jnp.dot(w1_ref[...], xT, preferred_element_type=jnp.float32) + b1_ref[...],
        0.0)                                                          # (64, TB)

    def bn_scale_shift(s_ref, q_ref, g_ref, be_ref):
        # Fold BN into per-feature scale/shift from single-pass sums (f32).
        mu = s_ref[...] * inv_n
        var = jnp.maximum(q_ref[...] * inv_n - mu * mu, 0.0)
        scale = jax.lax.rsqrt(var + EPS) * g_ref[...]
        shift = be_ref[...] - mu * scale
        return scale, shift                                           # (F, 1) each

    def layer2(h1v):
        scale1, shift1 = bn_scale_shift(sum1, sumsq1, g1_ref, be1_ref)
        h1n = h1v * scale1 + shift1
        return jnp.maximum(
            jnp.dot(w2_ref[...], h1n, preferred_element_type=jnp.float32) + b2_ref[...],
            0.0)                                                      # (32, TB)

    @pl.when(p == 0)
    def _phase0():
        hm = h1 * mask
        sum1[...] += jnp.sum(hm, axis=1, keepdims=True)
        sumsq1[...] += jnp.sum(h1 * hm, axis=1, keepdims=True)
        o_ref[...] = jnp.zeros_like(o_ref)

    @pl.when(p == 1)
    def _phase1():
        h2 = layer2(h1)
        hm = h2 * mask
        sum2[...] += jnp.sum(hm, axis=1, keepdims=True)
        sumsq2[...] += jnp.sum(h2 * hm, axis=1, keepdims=True)
        o_ref[...] = jnp.zeros_like(o_ref)

    @pl.when(p == 2)
    def _phase2():
        h2 = layer2(h1)
        scale2, shift2 = bn_scale_shift(sum2, sumsq2, g2_ref, be2_ref)
        h2n = h2 * scale2 + shift2
        # Layer 3 (out_features = 1): VPU multiply + sublane reduction instead of an
        # N=1 MXU matmul; result is already lane-dense over the batch.
        y = jnp.sum(h2n * w3_ref[...], axis=0, keepdims=True) + b3_ref[...]  # (1, TB)
        o_ref[...] = jnp.maximum(y, 0.0).astype(o_ref.dtype)


def covid19net_forward(x, params, *, tile_b=None):
    """x: [B, D] float32; params: dict (see init_params). Returns [B] float32."""
    B, D = x.shape
    if tile_b is None:
        # Biggest tile that does not over-pad the batch; small batches -> single tile.
        tile_b = min(_MAX_TILE_B, pl.cdiv(B, 128) * 128)
    nt = pl.cdiv(B, tile_b)
    b_pad = nt * tile_b
    if b_pad != B:
        x = jnp.pad(x, ((0, b_pad - B), (0, 0)))
    xT = jnp.transpose(x)                         # (D, b_pad): batch on the lane axis.

    kernel = functools.partial(_covid19_kernel, batch=B, tile_b=tile_b)

    def resident(shape):
        # Whole-array VMEM block with a constant index_map: loaded once, stays resident.
        return pl.BlockSpec(shape, lambda p, i: (0, 0))

    in_specs = [
        pl.BlockSpec((D, tile_b), lambda p, i: (0, i)),   # x tile, re-streamed per phase
        resident((64, D)), resident((64, 1)), resident((64, 1)), resident((64, 1)),
        resident((32, 64)), resident((32, 1)), resident((32, 1)), resident((32, 1)),
        resident((32, 1)), resident((1, 1)),
    ]

    param_bytes = 4 * (64 * D + 3 * 64 + 32 * 64 + 3 * 32 + 32 + 1)
    cost = pl.CostEstimate(
        flops=int(2 * b_pad * (3 * D * 64 + 2 * 64 * 32 + 32) + 12 * b_pad * 96),
        transcendentals=int(3 * nt * 96),
        bytes_accessed=int(3 * D * b_pad * 4 + param_bytes + 3 * b_pad * 4),
    )

    out = pl.pallas_call(
        kernel,
        out_shape=jax.ShapeDtypeStruct((1, b_pad), jnp.float32),
        grid=(3, nt),
        in_specs=in_specs,
        out_specs=pl.BlockSpec((1, tile_b), lambda p, i: (0, i)),
        scratch_shapes=[
            pltpu.VMEM((64, 1), jnp.float32), pltpu.VMEM((64, 1), jnp.float32),
            pltpu.VMEM((32, 1), jnp.float32), pltpu.VMEM((32, 1), jnp.float32),
        ],
        compiler_params=pltpu.CompilerParams(
            # Both axes carry the BN-stat accumulators -> "arbitrary".
            dimension_semantics=("arbitrary", "arbitrary"),
            vmem_limit_bytes=32 * 1024 * 1024,
        ),
        cost_estimate=cost,
    )(xT,
      params["w1"], params["b1"], params["g1"], params["be1"],
      params["w2"], params["b2"], params["g2"], params["be2"],
      params["w3"], params["b3"])
    return out[0, :B]                              # lane-dense (1, b_pad) -> [B]


def init_params(key, input_dim):
    """Deterministic synthetic params matching COVID19Net(input_dim).

    Weights use PyTorch (out_features, in_features) layout; biases / BN params are
    (features, 1) columns; w3 is stored as a (32, 1) column for the in-kernel VPU dot.
    """
    ks = jax.random.split(key, 6)

    def linear(kw, kb, fan_in, fan_out):
        bound = 1.0 / (fan_in ** 0.5)
        w = jax.random.uniform(kw, (fan_out, fan_in), jnp.float32, -bound, bound)
        b = jax.random.uniform(kb, (fan_out, 1), jnp.float32, -bound, bound)
        return w, b

    w1, b1 = linear(ks[0], ks[1], input_dim, 64)
    w2, b2 = linear(ks[2], ks[3], 64, 32)
    w3, b3 = linear(ks[4], ks[5], 32, 1)
    return {
        "w1": w1, "b1": b1,
        "g1": jnp.ones((64, 1), jnp.float32), "be1": jnp.zeros((64, 1), jnp.float32),
        "w2": w2, "b2": b2,
        "g2": jnp.ones((32, 1), jnp.float32), "be2": jnp.zeros((32, 1), jnp.float32),
        "w3": jnp.transpose(w3),                  # (32, 1)
        "b3": b3,                                  # (1, 1)
    }


def _reference(x, p):
    """Pure-JAX reference mirroring the PyTorch forward (training-mode BN)."""
    h = jnp.maximum(x @ p["w1"].T + p["b1"][:, 0], 0.0)
    mu = h.mean(0)
    var = ((h - mu) ** 2).mean(0)
    h = (h - mu) / jnp.sqrt(var + EPS) * p["g1"][:, 0] + p["be1"][:, 0]
    h = jnp.maximum(h @ p["w2"].T + p["b2"][:, 0], 0.0)
    mu = h.mean(0)
    var = ((h - mu) ** 2).mean(0)
    h = (h - mu) / jnp.sqrt(var + EPS) * p["g2"][:, 0] + p["be2"][:, 0]
    y = jnp.maximum(h @ p["w3"] + p["b3"][0, 0], 0.0)
    return y[:, 0]


if __name__ == "__main__":
    key = jax.random.PRNGKey(0)
    k_x, k_p = jax.random.split(key)

    # B not a multiple of 128 -> exercises padding + BN row masking.
    B, D = 200, 16
    x = jax.random.normal(k_x, (B, D), jnp.float32)
    params = init_params(k_p, D)
    ref = _reference(x, params)

    # Default adaptive tile: single batch tile (nt = 1).
    out = jax.block_until_ready(covid19net_forward(x, params))
    assert out.shape == (B,), out.shape
    assert jnp.allclose(out, ref, atol=1e-3, rtol=1e-3), (
        jnp.max(jnp.abs(out - ref)), out[:4], ref[:4])

    # Forced small tile: nt = 2 exercises the multi-tile two-phase BN accumulation.
    out2 = jax.block_until_ready(covid19net_forward(x, params, tile_b=128))
    assert jnp.allclose(out2, ref, atol=1e-3, rtol=1e-3), (
        jnp.max(jnp.abs(out2 - ref)), out2[:4], ref[:4])

    print("KERNEL_OK")
</pallas_src>

<mosaic_0001>
module attributes {stable_mosaic.version = 11 : i64} {
  func.func @_covid19_kernel(%arg0: i32, %arg1: i32, %arg2: memref<16x256xf32, #tpu.memory_space<vmem>>, %arg3: memref<64x16xf32, #tpu.memory_space<vmem>>, %arg4: memref<64x1xf32, #tpu.memory_space<vmem>>, %arg5: memref<64x1xf32, #tpu.memory_space<vmem>>, %arg6: memref<64x1xf32, #tpu.memory_space<vmem>>, %arg7: memref<32x64xf32, #tpu.memory_space<vmem>>, %arg8: memref<32x1xf32, #tpu.memory_space<vmem>>, %arg9: memref<32x1xf32, #tpu.memory_space<vmem>>, %arg10: memref<32x1xf32, #tpu.memory_space<vmem>>, %arg11: memref<32x1xf32, #tpu.memory_space<vmem>>, %arg12: memref<1x1xf32, #tpu.memory_space<vmem>>, %arg13: memref<1x256xf32, #tpu.memory_space<vmem>>, %arg14: memref<64x1xf32, #tpu.memory_space<vmem>>, %arg15: memref<64x1xf32, #tpu.memory_space<vmem>>, %arg16: memref<32x1xf32, #tpu.memory_space<vmem>>, %arg17: memref<32x1xf32, #tpu.memory_space<vmem>>) attributes {dimension_semantics = [#tpu.dimension_semantics<arbitrary>, #tpu.dimension_semantics<arbitrary>], iteration_bounds = array<i64: 3, 1>, scalar_prefetch = 0 : i64, scratch_operands = 4 : i64, tpu.core_type = #tpu.core_type<tc>, window_params = [{transform_indices = @transform_0, window_bounds = array<i64: 16, 256>}, {pipeline_mode = #tpu.pipeline_mode<synchronous>, transform_indices = @transform_1, window_bounds = array<i64: 64, 16>}, {pipeline_mode = #tpu.pipeline_mode<synchronous>, transform_indices = @transform_2, window_bounds = array<i64: 64, 1>}, {pipeline_mode = #tpu.pipeline_mode<synchronous>, transform_indices = @transform_3, window_bounds = array<i64: 64, 1>}, {pipeline_mode = #tpu.pipeline_mode<synchronous>, transform_indices = @transform_4, window_bounds = array<i64: 64, 1>}, {pipeline_mode = #tpu.pipeline_mode<synchronous>, transform_indices = @transform_5, window_bounds = array<i64: 32, 64>}, {pipeline_mode = #tpu.pipeline_mode<synchronous>, transform_indices = @transform_6, window_bounds = array<i64: 32, 1>}, {pipeline_mode = #tpu.pipeline_mode<synchronous>, transform_indices = @transform_7, window_bounds = array<i64: 32, 1>}, {pipeline_mode = #tpu.pipeline_mode<synchronous>, transform_indices = @transform_8, window_bounds = array<i64: 32, 1>}, {pipeline_mode = #tpu.pipeline_mode<synchronous>, transform_indices = @transform_9, window_bounds = array<i64: 32, 1>}, {pipeline_mode = #tpu.pipeline_mode<synchronous>, transform_indices = @transform_10, window_bounds = array<i64: 1, 1>}, {transform_indices = @transform_11, window_bounds = array<i64: 1, 256>}]} {
    %c0_i32 = arith.constant 0 : i32
    %0 = arith.cmpi eq, %arg0, %c0_i32 : i32
    %c0_i32_0 = arith.constant 0 : i32
    %1 = arith.cmpi eq, %arg1, %c0_i32_0 : i32
    %2 = arith.andi %0, %1 : i1
    %3 = arith.extui %2 : i1 to i32
    %c0_i32_1 = arith.constant 0 : i32
    %4 = arith.cmpi ne, %3, %c0_i32_1 : i32
    scf.if %4 {
      %cst_14 = arith.constant 0.000000e+00 : f32
      %30 = vector.broadcast %cst_14 : f32 to vector<64x1xf32>
      %c0_15 = arith.constant 0 : index
      %c0_16 = arith.constant 0 : index
      %31 = vector.load %arg14[%c0_15, %c0_16] : memref<64x1xf32, #tpu.memory_space<vmem>>, vector<64x1xf32>
      tpu.vector_store %arg14[%c0_15, %c0_16], %30 {strides = array<i32>} : memref<64x1xf32, #tpu.memory_space<vmem>>, vector<64x1xf32>,
      %cst_17 = arith.constant 0.000000e+00 : f32
      %32 = vector.broadcast %cst_17 : f32 to vector<64x1xf32>
      %c0_18 = arith.constant 0 : index
      %c0_19 = arith.constant 0 : index
      %33 = vector.load %arg15[%c0_18, %c0_19] : memref<64x1xf32, #tpu.memory_space<vmem>>, vector<64x1xf32>
      tpu.vector_store %arg15[%c0_18, %c0_19], %32 {strides = array<i32>} : memref<64x1xf32, #tpu.memory_space<vmem>>, vector<64x1xf32>,
      %cst_20 = arith.constant 0.000000e+00 : f32
      %34 = vector.broadcast %cst_20 : f32 to vector<32x1xf32>
      %c0_21 = arith.constant 0 : index
      %c0_22 = arith.constant 0 : index
      %35 = vector.load %arg16[%c0_21, %c0_22] : memref<32x1xf32, #tpu.memory_space<vmem>>, vector<32x1xf32>
      tpu.vector_store %arg16[%c0_21, %c0_22], %34 {strides = array<i32>} : memref<32x1xf32, #tpu.memory_space<vmem>>, vector<32x1xf32>,
      %cst_23 = arith.constant 0.000000e+00 : f32
      %36 = vector.broadcast %cst_23 : f32 to vector<32x1xf32>
      %c0_24 = arith.constant 0 : index
      %c0_25 = arith.constant 0 : index
      %37 = vector.load %arg17[%c0_24, %c0_25] : memref<32x1xf32, #tpu.memory_space<vmem>>, vector<32x1xf32>
      tpu.vector_store %arg17[%c0_24, %c0_25], %36 {strides = array<i32>} : memref<32x1xf32, #tpu.memory_space<vmem>>, vector<32x1xf32>,
    } else {
    }
    %5 = tpu.iota {dimensions = array<i32: 1>} : vector<1x256xi32>
    %c256_i32 = arith.constant 256 : i32
    %6 = arith.muli %arg1, %c256_i32 : i32
    %7 = vector.broadcast %6 : i32 to vector<1x256xi32>
    %8 = arith.addi %5, %7 : vector<1x256xi32>
    %c200_i32 = arith.constant 200 : i32
    %9 = vector.broadcast %c200_i32 : i32 to vector<1x256xi32>
    %10 = arith.cmpi slt, %8, %9 : vector<1x256xi32>
    %11 = arith.extui %10 : vector<1x256xi1> to vector<1x256xi32>
    %12 = arith.sitofp %11 : vector<1x256xi32> to vector<1x256xf32>
    %c0 = arith.constant 0 : index
    %c0_2 = arith.constant 0 : index
    %13 = vector.load %arg2[%c0, %c0_2] : memref<16x256xf32, #tpu.memory_space<vmem>>, vector<16x256xf32>
    %c0_3 = arith.constant 0 : index
    %c0_4 = arith.constant 0 : index
    %14 = vector.load %arg3[%c0_3, %c0_4] : memref<64x16xf32, #tpu.memory_space<vmem>>, vector<64x16xf32>
    %cst = arith.constant dense<0.000000e+00> : vector<64x256xf32>
    %15 = tpu.matmul %14, %13, %cst {dimension_numbers = #tpu.dot_dimension_numbers<[1], [0], [0], [1], [0, 0, 1, 1], [], []>} : vector<64x16xf32>, vector<16x256xf32>, vector<64x256xf32> -> vector<64x256xf32>
    %c0_5 = arith.constant 0 : index
    %c0_6 = arith.constant 0 : index
    %16 = vector.load %arg4[%c0_5, %c0_6] : memref<64x1xf32, #tpu.memory_space<vmem>>, vector<64x1xf32>
    %17 = vector.broadcast %16 : vector<64x1xf32> to vector<64x256xf32>
    %18 = arith.addf %15, %17 : vector<64x256xf32>
    %cst_7 = arith.constant 0.000000e+00 : f32
    %19 = vector.broadcast %cst_7 : f32 to vector<64x256xf32>
    %20 = arith.maximumf %18, %19 : vector<64x256xf32>
    %c0_i32_8 = arith.constant 0 : i32
    %21 = arith.cmpi eq, %arg0, %c0_i32_8 : i32
    %22 = arith.extui %21 : i1 to i32
    %c0_i32_9 = arith.constant 0 : i32
    %23 = arith.cmpi ne, %22, %c0_i32_9 : i32
    scf.if %23 {
      %30 = vector.broadcast %12 : vector<1x256xf32> to vector<64x256xf32>
      %31 = arith.mulf %20, %30 : vector<64x256xf32>
      %c0_14 = arith.constant 0 : index
      %c0_15 = arith.constant 0 : index
      %32 = vector.load %arg14[%c0_14, %c0_15] : memref<64x1xf32, #tpu.memory_space<vmem>>, vector<64x1xf32>
      %cst_16 = arith.constant dense<0.000000e+00> : vector<64xf32>
      %33 = vector.multi_reduction <add>, %31, %cst_16 [1] : vector<64x256xf32> to vector<64xf32>
      %34 = vector.shape_cast %33 : vector<64xf32> to vector<64x1xf32>
      %35 = arith.addf %32, %34 : vector<64x1xf32>
      %c0_17 = arith.constant 0 : index
      %c0_18 = arith.constant 0 : index
      %36 = vector.load %arg14[%c0_17, %c0_18] : memref<64x1xf32, #tpu.memory_space<vmem>>, vector<64x1xf32>
      tpu.vector_store %arg14[%c0_17, %c0_18], %35 {strides = array<i32>} : memref<64x1xf32, #tpu.memory_space<vmem>>, vector<64x1xf32>,
      %c0_19 = arith.constant 0 : index
      %c0_20 = arith.constant 0 : index
      %37 = vector.load %arg15[%c0_19, %c0_20] : memref<64x1xf32, #tpu.memory_space<vmem>>, vector<64x1xf32>
      %38 = arith.mulf %20, %31 : vector<64x256xf32>
      %cst_21 = arith.constant dense<0.000000e+00> : vector<64xf32>
      %39 = vector.multi_reduction <add>, %38, %cst_21 [1] : vector<64x256xf32> to vector<64xf32>
      %40 = vector.shape_cast %39 : vector<64xf32> to vector<64x1xf32>
      %41 = arith.addf %37, %40 : vector<64x1xf32>
      %c0_22 = arith.constant 0 : index
      %c0_23 = arith.constant 0 : index
      %42 = vector.load %arg15[%c0_22, %c0_23] : memref<64x1xf32, #tpu.memory_space<vmem>>, vector<64x1xf32>
      tpu.vector_store %arg15[%c0_22, %c0_23], %41 {strides = array<i32>} : memref<64x1xf32, #tpu.memory_space<vmem>>, vector<64x1xf32>,
      %cst_24 = arith.constant 0.000000e+00 : f32
      %43 = vector.broadcast %cst_24 : f32 to vector<1x256xf32>
      %c0_25 = arith.constant 0 : index
      %c0_26 = arith.constant 0 : index
      %44 = vector.load %arg13[%c0_25, %c0_26] : memref<1x256xf32, #tpu.memory_space<vmem>>, vector<1x256xf32>
      tpu.vector_store %arg13[%c0_25, %c0_26], %43 {strides = array<i32>} : memref<1x256xf32, #tpu.memory_space<vmem>>, vector<1x256xf32>,
    } else {
    }
    %c1_i32 = arith.constant 1 : i32
    %24 = arith.cmpi eq, %arg0, %c1_i32 : i32
    %25 = arith.extui %24 : i1 to i32
    %cst_10 = arith.constant 5.000000e-03 : f32
    %c0_i32_11 = arith.constant 0 : i32
    %26 = arith.cmpi ne, %25, %c0_i32_11 : i32
    scf.if %26 {
      %c0_14 = arith.constant 0 : index
      %c0_15 = arith.constant 0 : index
      %30 = vector.load %arg14[%c0_14, %c0_15] : memref<64x1xf32, #tpu.memory_space<vmem>>, vector<64x1xf32>
      %31 = vector.broadcast %cst_10 : f32 to vector<64x1xf32>
      %32 = arith.mulf %30, %31 : vector<64x1xf32>
      %c0_16 = arith.constant 0 : index
      %c0_17 = arith.constant 0 : index
      %33 = vector.load %arg15[%c0_16, %c0_17] : memref<64x1xf32, #tpu.memory_space<vmem>>, vector<64x1xf32>
      %34 = vector.broadcast %cst_10 : f32 to vector<64x1xf32>
      %35 = arith.mulf %33, %34 : vector<64x1xf32>
      %36 = arith.mulf %32, %32 : vector<64x1xf32>
      %37 = arith.subf %35, %36 : vector<64x1xf32>
      %cst_18 = arith.constant 0.000000e+00 : f32
      %38 = vector.broadcast %cst_18 : f32 to vector<64x1xf32>
      %39 = arith.maximumf %37, %38 : vector<64x1xf32>
      %cst_19 = arith.constant 9.99999974E-6 : f32
      %40 = vector.broadcast %cst_19 : f32 to vector<64x1xf32>
      %41 = arith.addf %39, %40 : vector<64x1xf32>
      %42 = math.rsqrt %41 : vector<64x1xf32>
      %c0_20 = arith.constant 0 : index
      %c0_21 = arith.constant 0 : index
      %43 = vector.load %arg5[%c0_20, %c0_21] : memref<64x1xf32, #tpu.memory_space<vmem>>, vector<64x1xf32>
      %44 = arith.mulf %42, %43 : vector<64x1xf32>
      %c0_22 = arith.constant 0 : index
      %c0_23 = arith.constant 0 : index
      %45 = vector.load %arg6[%c0_22, %c0_23] : memref<64x1xf32, #tpu.memory_space<vmem>>, vector<64x1xf32>
      %46 = arith.mulf %32, %44 : vector<64x1xf32>
      %47 = arith.subf %45, %46 : vector<64x1xf32>
      %48 = vector.broadcast %44 : vector<64x1xf32> to vector<64x256xf32>
      %49 = arith.mulf %20, %48 : vector<64x256xf32>
      %50 = vector.broadcast %47 : vector<64x1xf32> to vector<64x256xf32>
      %51 = arith.addf %49, %50 : vector<64x256xf32>
      %c0_24 = arith.constant 0 : index
      %c0_25 = arith.constant 0 : index
      %52 = vector.load %arg7[%c0_24, %c0_25] : memref<32x64xf32, #tpu.memory_space<vmem>>, vector<32x64xf32>
      %cst_26 = arith.constant dense<0.000000e+00> : vector<32x256xf32>
      %53 = tpu.matmul %52, %51, %cst_26 {dimension_numbers = #tpu.dot_dimension_numbers<[1], [0], [0], [1], [0, 0, 1, 1], [], []>} : vector<32x64xf32>, vector<64x256xf32>, vector<32x256xf32> -> vector<32x256xf32>
      %c0_27 = arith.constant 0 : index
      %c0_28 = arith.constant 0 : index
      %54 = vector.load %arg8[%c0_27, %c0_28] : memref<32x1xf32, #tpu.memory_space<vmem>>, vector<32x1xf32>
      %55 = vector.broadcast %54 : vector<32x1xf32> to vector<32x256xf32>
      %56 = arith.addf %53, %55 : vector<32x256xf32>
      %cst_29 = arith.constant 0.000000e+00 : f32
      %57 = vector.broadcast %cst_29 : f32 to vector<32x256xf32>
      %58 = arith.maximumf %56, %57 : vector<32x256xf32>
      %59 = vector.broadcast %12 : vector<1x256xf32> to vector<32x256xf32>
      %60 = arith.mulf %58, %59 : vector<32x256xf32>
      %c0_30 = arith.constant 0 : index
      %c0_31 = arith.constant 0 : index
      %61 = vector.load %arg16[%c0_30, %c0_31] : memref<32x1xf32, #tpu.memory_space<vmem>>, vector<32x1xf32>
      %cst_32 = arith.constant dense<0.000000e+00> : vector<32xf32>
      %62 = vector.multi_reduction <add>, %60, %cst_32 [1] : vector<32x256xf32> to vector<32xf32>
      %63 = vector.shape_cast %62 : vector<32xf32> to vector<32x1xf32>
      %64 = arith.addf %61, %63 : vector<32x1xf32>
      %c0_33 = arith.constant 0 : index
      %c0_34 = arith.constant 0 : index
      %65 = vector.load %arg16[%c0_33, %c0_34] : memref<32x1xf32, #tpu.memory_space<vmem>>, vector<32x1xf32>
      tpu.vector_store %arg16[%c0_33, %c0_34], %64 {strides = array<i32>} : memref<32x1xf32, #tpu.memory_space<vmem>>, vector<32x1xf32>,
      %c0_35 = arith.constant 0 : index
      %c0_36 = arith.constant 0 : index
      %66 = vector.load %arg17[%c0_35, %c0_36] : memref<32x1xf32, #tpu.memory_space<vmem>>, vector<32x1xf32>
      %67 = arith.mulf %58, %60 : vector<32x256xf32>
      %cst_37 = arith.constant dense<0.000000e+00> : vector<32xf32>
      %68 = vector.multi_reduction <add>, %67, %cst_37 [1] : vector<32x256xf32> to vector<32xf32>
      %69 = vector.shape_cast %68 : vector<32xf32> to vector<32x1xf32>
      %70 = arith.addf %66, %69 : vector<32x1xf32>
      %c0_38 = arith.constant 0 : index
      %c0_39 = arith.constant 0 : index
      %71 = vector.load %arg17[%c0_38, %c0_39] : memref<32x1xf32, #tpu.memory_space<vmem>>, vector<32x1xf32>
      tpu.vector_store %arg17[%c0_38, %c0_39], %70 {strides = array<i32>} : memref<32x1xf32, #tpu.memory_space<vmem>>, vector<32x1xf32>,
      %cst_40 = arith.constant 0.000000e+00 : f32
      %72 = vector.broadcast %cst_40 : f32 to vector<1x256xf32>
      %c0_41 = arith.constant 0 : index
      %c0_42 = arith.constant 0 : index
      %73 = vector.load %arg13[%c0_41, %c0_42] : memref<1x256xf32, #tpu.memory_space<vmem>>, vector<1x256xf32>
      tpu.vector_store %arg13[%c0_41, %c0_42], %72 {strides = array<i32>} : memref<1x256xf32, #tpu.memory_space<vmem>>, vector<1x256xf32>,
    } else {
    }
    %c2_i32 = arith.constant 2 : i32
    %27 = arith.cmpi eq, %arg0, %c2_i32 : i32
    %28 = arith.extui %27 : i1 to i32
    %cst_12 = arith.constant 5.000000e-03 : f32
    %c0_i32_13 = arith.constant 0 : i32
    %29 = arith.cmpi ne, %28, %c0_i32_13 : i32
    scf.if %29 {
      %c0_14 = arith.constant 0 : index
      %c0_15 = arith.constant 0 : index
      %30 = vector.load %arg14[%c0_14, %c0_15] : memref<64x1xf32, #tpu.memory_space<vmem>>, vector<64x1xf32>
      %31 = vector.broadcast %cst_12 : f32 to vector<64x1xf32>
      %32 = arith.mulf %30, %31 : vector<64x1xf32>
      %c0_16 = arith.constant 0 : index
      %c0_17 = arith.constant 0 : index
      %33 = vector.load %arg15[%c0_16, %c0_17] : memref<64x1xf32, #tpu.memory_space<vmem>>, vector<64x1xf32>
      %34 = vector.broadcast %cst_12 : f32 to vector<64x1xf32>
      %35 = arith.mulf %33, %34 : vector<64x1xf32>
      %36 = arith.mulf %32, %32 : vector<64x1xf32>
      %37 = arith.subf %35, %36 : vector<64x1xf32>
      %cst_18 = arith.constant 0.000000e+00 : f32
      %38 = vector.broadcast %cst_18 : f32 to vector<64x1xf32>
      %39 = arith.maximumf %37, %38 : vector<64x1xf32>
      %cst_19 = arith.constant 9.99999974E-6 : f32
      %40 = vector.broadcast %cst_19 : f32 to vector<64x1xf32>
      %41 = arith.addf %39, %40 : vector<64x1xf32>
      %42 = math.rsqrt %41 : vector<64x1xf32>
      %c0_20 = arith.constant 0 : index
      %c0_21 = arith.constant 0 : index
      %43 = vector.load %arg5[%c0_20, %c0_21] : memref<64x1xf32, #tpu.memory_space<vmem>>, vector<64x1xf32>
      %44 = arith.mulf %42, %43 : vector<64x1xf32>
      %c0_22 = arith.constant 0 : index
      %c0_23 = arith.constant 0 : index
      %45 = vector.load %arg6[%c0_22, %c0_23] : memref<64x1xf32, #tpu.memory_space<vmem>>, vector<64x1xf32>
      %46 = arith.mulf %32, %44 : vector<64x1xf32>
      %47 = arith.subf %45, %46 : vector<64x1xf32>
      %48 = vector.broadcast %44 : vector<64x1xf32> to vector<64x256xf32>
      %49 = arith.mulf %20, %48 : vector<64x256xf32>
      %50 = vector.broadcast %47 : vector<64x1xf32> to vector<64x256xf32>
      %51 = arith.addf %49, %50 : vector<64x256xf32>
      %c0_24 = arith.constant 0 : index
      %c0_25 = arith.constant 0 : index
      %52 = vector.load %arg7[%c0_24, %c0_25] : memref<32x64xf32, #tpu.memory_space<vmem>>, vector<32x64xf32>
      %cst_26 = arith.constant dense<0.000000e+00> : vector<32x256xf32>
      %53 = tpu.matmul %52, %51, %cst_26 {dimension_numbers = #tpu.dot_dimension_numbers<[1], [0], [0], [1], [0, 0, 1, 1], [], []>} : vector<32x64xf32>, vector<64x256xf32>, vector<32x256xf32> -> vector<32x256xf32>
      %c0_27 = arith.constant 0 : index
      %c0_28 = arith.constant 0 : index
      %54 = vector.load %arg8[%c0_27, %c0_28] : memref<32x1xf32, #tpu.memory_space<vmem>>, vector<32x1xf32>
      %55 = vector.broadcast %54 : vector<32x1xf32> to vector<32x256xf32>
      %56 = arith.addf %53, %55 : vector<32x256xf32>
      %cst_29 = arith.constant 0.000000e+00 : f32
      %57 = vector.broadcast %cst_29 : f32 to vector<32x256xf32>
      %58 = arith.maximumf %56, %57 : vector<32x256xf32>
      %c0_30 = arith.constant 0 : index
      %c0_31 = arith.constant 0 : index
      %59 = vector.load %arg16[%c0_30, %c0_31] : memref<32x1xf32, #tpu.memory_space<vmem>>, vector<32x1xf32>
      %60 = vector.broadcast %cst_12 : f32 to vector<32x1xf32>
      %61 = arith.mulf %59, %60 : vector<32x1xf32>
      %c0_32 = arith.constant 0 : index
      %c0_33 = arith.constant 0 : index
      %62 = vector.load %arg17[%c0_32, %c0_33] : memref<32x1xf32, #tpu.memory_space<vmem>>, vector<32x1xf32>
      %63 = vector.broadcast %cst_12 : f32 to vector<32x1xf32>
      %64 = arith.mulf %62, %63 : vector<32x1xf32>
      %65 = arith.mulf %61, %61 : vector<32x1xf32>
      %66 = arith.subf %64, %65 : vector<32x1xf32>
      %cst_34 = arith.constant 0.000000e+00 : f32
      %67 = vector.broadcast %cst_34 : f32 to vector<32x1xf32>
      %68 = arith.maximumf %66, %67 : vector<32x1xf32>
      %cst_35 = arith.constant 9.99999974E-6 : f32
      %69 = vector.broadcast %cst_35 : f32 to vector<32x1xf32>
      %70 = arith.addf %68, %69 : vector<32x1xf32>
      %71 = math.rsqrt %70 : vector<32x1xf32>
      %c0_36 = arith.constant 0 : index
      %c0_37 = arith.constant 0 : index
      %72 = vector.load %arg9[%c0_36, %c0_37] : memref<32x1xf32, #tpu.memory_space<vmem>>, vector<32x1xf32>
      %73 = arith.mulf %71, %72 : vector<32x1xf32>
      %c0_38 = arith.constant 0 : index
      %c0_39 = arith.constant 0 : index
      %74 = vector.load %arg10[%c0_38, %c0_39] : memref<32x1xf32, #tpu.memory_space<vmem>>, vector<32x1xf32>
      %75 = arith.mulf %61, %73 : vector<32x1xf32>
      %76 = arith.subf %74, %75 : vector<32x1xf32>
      %77 = vector.broadcast %73 : vector<32x1xf32> to vector<32x256xf32>
      %78 = arith.mulf %58, %77 : vector<32x256xf32>
      %79 = vector.broadcast %76 : vector<32x1xf32> to vector<32x256xf32>
      %80 = arith.addf %78, %79 : vector<32x256xf32>
      %c0_40 = arith.constant 0 : index
      %c0_41 = arith.constant 0 : index
      %81 = vector.load %arg11[%c0_40, %c0_41] : memref<32x1xf32, #tpu.memory_space<vmem>>, vector<32x1xf32>
      %82 = vector.broadcast %81 : vector<32x1xf32> to vector<32x256xf32>
      %83 = arith.mulf %80, %82 : vector<32x256xf32>
      %cst_42 = arith.constant dense<0.000000e+00> : vector<256xf32>
      %84 = vector.multi_reduction <add>, %83, %cst_42 [0] : vector<32x256xf32> to vector<256xf32>
      %85 = vector.shape_cast %84 : vector<256xf32> to vector<1x256xf32>
      %c0_43 = arith.constant 0 : index
      %c0_44 = arith.constant 0 : index
      %86 = vector.load %arg12[%c0_43, %c0_44] : memref<1x1xf32, #tpu.memory_space<vmem>>, vector<1x1xf32>
      %87 = vector.broadcast %86 : vector<1x1xf32> to vector<1x256xf32>
      %88 = arith.addf %85, %87 : vector<1x256xf32>
      %cst_45 = arith.constant 0.000000e+00 : f32
      %89 = vector.broadcast %cst_45 : f32 to vector<1x256xf32>
      %90 = arith.maximumf %88, %89 : vector<1x256xf32>
      %c0_46 = arith.constant 0 : index
      %c0_47 = arith.constant 0 : index
      %91 = vector.load %arg13[%c0_46, %c0_47] : memref<1x256xf32, #tpu.memory_space<vmem>>, vector<1x256xf32>
      tpu.vector_store %arg13[%c0_46, %c0_47], %90 {strides = array<i32>} : memref<1x256xf32, #tpu.memory_space<vmem>>, vector<1x256xf32>,
    } else {
    }
    return
  }
  func.func @transform_0(%arg0: i32, %arg1: i32) -> (i32, i32) {
    %c0_i32 = arith.constant 0 : i32
    %c0_i32_0 = arith.constant 0 : i32
    return %c0_i32, %arg1 : i32, i32
  }
  func.func @transform_1(%arg0: i32, %arg1: i32) -> (i32, i32) {
    %c0_i32 = arith.constant 0 : i32
    %c0_i32_0 = arith.constant 0 : i32
    %c0_i32_1 = arith.constant 0 : i32
    return %c0_i32, %c0_i32_0 : i32, i32
  }
  func.func @transform_2(%arg0: i32, %arg1: i32) -> (i32, i32) {
    %c0_i32 = arith.constant 0 : i32
    %c0_i32_0 = arith.constant 0 : i32
    %c0_i32_1 = arith.constant 0 : i32
    return %c0_i32, %c0_i32_0 : i32, i32
  }
  func.func @transform_3(%arg0: i32, %arg1: i32) -> (i32, i32) {
    %c0_i32 = arith.constant 0 : i32
    %c0_i32_0 = arith.constant 0 : i32
    %c0_i32_1 = arith.constant 0 : i32
    return %c0_i32, %c0_i32_0 : i32, i32
  }
  func.func @transform_4(%arg0: i32, %arg1: i32) -> (i32, i32) {
    %c0_i32 = arith.constant 0 : i32
    %c0_i32_0 = arith.constant 0 : i32
    %c0_i32_1 = arith.constant 0 : i32
    return %c0_i32, %c0_i32_0 : i32, i32
  }
  func.func @transform_5(%arg0: i32, %arg1: i32) -> (i32, i32) {
    %c0_i32 = arith.constant 0 : i32
    %c0_i32_0 = arith.constant 0 : i32
    %c0_i32_1 = arith.constant 0 : i32
    return %c0_i32, %c0_i32_0 : i32, i32
  }
  func.func @transform_6(%arg0: i32, %arg1: i32) -> (i32, i32) {
    %c0_i32 = arith.constant 0 : i32
    %c0_i32_0 = arith.constant 0 : i32
    %c0_i32_1 = arith.constant 0 : i32
    return %c0_i32, %c0_i32_0 : i32, i32
  }
  func.func @transform_7(%arg0: i32, %arg1: i32) -> (i32, i32) {
    %c0_i32 = arith.constant 0 : i32
    %c0_i32_0 = arith.constant 0 : i32
    %c0_i32_1 = arith.constant 0 : i32
    return %c0_i32, %c0_i32_0 : i32, i32
  }
  func.func @transform_8(%arg0: i32, %arg1: i32) -> (i32, i32) {
    %c0_i32 = arith.constant 0 : i32
    %c0_i32_0 = arith.constant 0 : i32
    %c0_i32_1 = arith.constant 0 : i32
    return %c0_i32, %c0_i32_0 : i32, i32
  }
  func.func @transform_9(%arg0: i32, %arg1: i32) -> (i32, i32) {
    %c0_i32 = arith.constant 0 : i32
    %c0_i32_0 = arith.constant 0 : i32
    %c0_i32_1 = arith.constant 0 : i32
    return %c0_i32, %c0_i32_0 : i32, i32
  }
  func.func @transform_10(%arg0: i32, %arg1: i32) -> (i32, i32) {
    %c0_i32 = arith.constant 0 : i32
    %c0_i32_0 = arith.constant 0 : i32
    %c0_i32_1 = arith.constant 0 : i32
    return %c0_i32, %c0_i32_0 : i32, i32
  }
  func.func @transform_11(%arg0: i32, %arg1: i32) -> (i32, i32) {
    %c0_i32 = arith.constant 0 : i32
    %c0_i32_0 = arith.constant 0 : i32
    return %c0_i32, %arg1 : i32, i32
  }
}

</mosaic_0001>

<bundles_post_ra>
// kernel: tpu_custom_call.1
= control target key start
LH: loop header
LB: loop body
LE: loop exit
PB: predicated region body
PF: predicated region fallthrough
CT: control target
= control target key end

     0   :  { %s2710_s0 = inlined_call_operand.vmem [shape: f32[16,256], index: 0, kind: input, shape index: {}]   ;;  %s2711_s1 = inlined_call_operand.vmem [shape: f32[64,16], index: 1, kind: input, shape index: {}]   ;;  %s2712_s2 = inlined_call_operand.vmem [shape: f32[64,1], index: 2, kind: input, shape index: {}]   ;;  %s2713_s3 = inlined_call_operand.vmem [shape: f32[64,1], index: 3, kind: input, shape index: {}]   ;;  %s2714_s4 = inlined_call_operand.vmem [shape: f32[64,1], index: 4, kind: input, shape index: {}]   ;;  %s2715_s5 = inlined_call_operand.vmem [shape: f32[32,64], index: 5, kind: input, shape index: {}]   ;;  %s2716_s6 = inlined_call_operand.vmem [shape: f32[32,1], index: 6, kind: input, shape index: {}]   ;;  %s2717_s7 = inlined_call_operand.vmem [shape: f32[32,1], index: 7, kind: input, shape index: {}]   ;;  %s2718_s8 = inlined_call_operand.vmem [shape: f32[32,1], index: 8, kind: input, shape index: {}]   ;;  %s2719_s9 = inlined_call_operand.vmem [shape: f32[32,1], index: 9, kind: input, shape index: {}]   ;;  %s2720_s10 = inlined_call_operand.<no memory space> [shape: f32[1,1], index: 10, kind: input, shape index: {}]   ;;  %s2721_s11 = inlined_call_operand.hbm [shape: f32[1,256], index: 11, kind: output, shape index: {}]  }
   0x1   :  { %v16_v0 = vstv %s2720_s10 }
   0x2   :  { %17 = vst [vmem:[#allocation6] sm:$0x1] %v16_v0 }
   0x3   :  { %18 = vsyncpa [#allocation8], 0  ;;  %s2131_s19 = smov 0   ;;  %s2133_s20 = smov 0  }
   0x4   :  { %s2135_s21 = smov 0  }
   0x5 LB: > { %s1854_s10 = sadd.s32 4294967295, %s2056_s21   ;;  %s36_s22 = sadd.s32 1, %s2052_s20  ;;  %s2056_s21 = sphi %s2135_s21, %s24_s21   ;;  %s2052_s20 = sphi %s2133_s20, %s2724_s20   ;;  %s2048_s19 = sphi %s2131_s19, %s2723_s19  }
   0x6   : > { %p38_p0 = scmp.ge.s32.totalorder %s36_s22, 3  ;;  %p1857_p1 = scmp.ge.s32.totalorder %s2056_s21, 1 }
   0x7   : > { %p353_p2 = scmp.lt.s32.totalorder %s2056_s21, 4 }
   0x8   : > { %s2726_s22 = smov (%p38_p0, %s36_s22), 0 }
   0x9   : > { %p354_p3 = pnand %p1857_p1, %p353_p2 }
   0xa   : > { %p395_p4 = scmp.eq.s32.totalorder (!%p354_p3), %s2048_s19, 0 }
   0xb   : > { %357 = sbr.rel (%p354_p3) target bundleno = 1415 (0x587), region = 64 }
  0x10   : > { %400 = sbr.rel (!%p395_p4) target bundleno = 29 (0x1d), region = 68  ;;  %vm401_vm0 = vcmask (%p395_p4), 7168   ;;  %v2058_v1 = vmov (%p395_p4), 0.0  }
  0x11   : > { %402 = vst.msk [vmem:[#allocation2] sm:$0xff] (%p395_p4), %vm401_vm0, %v2058_v1  ;;  %403 = vst.msk [vmem:[#allocation2 + $0x8] sm:$0xff] (%p395_p4), %vm401_vm0, %v2058_v1 }
  0x12   : > { %404 = vst.msk [vmem:[#allocation2 + $0x10] sm:$0xff] (%p395_p4), %vm401_vm0, %v2058_v1  ;;  %405 = vst.msk [vmem:[#allocation2 + $0x18] sm:$0xff] (%p395_p4), %vm401_vm0, %v2058_v1 }
  0x13   : > { %406 = vst.msk [vmem:[#allocation2 + $0x20] sm:$0xff] (%p395_p4), %vm401_vm0, %v2058_v1  ;;  %407 = vst.msk [vmem:[#allocation2 + $0x28] sm:$0xff] (%p395_p4), %vm401_vm0, %v2058_v1 }
  0x14   : > { %408 = vst.msk [vmem:[#allocation2 + $0x30] sm:$0xff] (%p395_p4), %vm401_vm0, %v2058_v1  ;;  %409 = vst.msk [vmem:[#allocation2 + $0x38] sm:$0xff] (%p395_p4), %vm401_vm0, %v2058_v1 }
  0x15   : > { %410 = vst.msk [vmem:[#allocation3] sm:$0xff] %vm401_vm0, %v2058_v1  ;;  %411 = vst.msk [vmem:[#allocation3 + $0x8] sm:$0xff] %vm401_vm0, %v2058_v1 }
  0x16   : > { %412 = vst.msk [vmem:[#allocation3 + $0x10] sm:$0xff] %vm401_vm0, %v2058_v1  ;;  %413 = vst.msk [vmem:[#allocation3 + $0x18] sm:$0xff] %vm401_vm0, %v2058_v1 }
  0x17   : > { %414 = vst.msk [vmem:[#allocation3 + $0x20] sm:$0xff] %vm401_vm0, %v2058_v1  ;;  %415 = vst.msk [vmem:[#allocation3 + $0x28] sm:$0xff] %vm401_vm0, %v2058_v1 }
  0x18   : > { %416 = vst.msk [vmem:[#allocation3 + $0x30] sm:$0xff] %vm401_vm0, %v2058_v1  ;;  %417 = vst.msk [vmem:[#allocation3 + $0x38] sm:$0xff] %vm401_vm0, %v2058_v1 }
  0x19   : > { %418 = vst.msk [vmem:[#allocation4] sm:$0xff] %vm401_vm0, %v2058_v1  ;;  %419 = vst.msk [vmem:[#allocation4 + $0x8] sm:$0xff] %vm401_vm0, %v2058_v1 }
  0x1a   : > { %420 = vst.msk [vmem:[#allocation4 + $0x10] sm:$0xff] %vm401_vm0, %v2058_v1  ;;  %421 = vst.msk [vmem:[#allocation4 + $0x18] sm:$0xff] %vm401_vm0, %v2058_v1 }
  0x1b   : > { %422 = vst.msk [vmem:[#allocation5] sm:$0xff] %vm401_vm0, %v2058_v1  ;;  %423 = vst.msk [vmem:[#allocation5 + $0x8] sm:$0xff] %vm401_vm0, %v2058_v1 }
  0x1c   : > { %424 = vst.msk [vmem:[#allocation5 + $0x10] sm:$0xff] %vm401_vm0, %v2058_v1  ;;  %425 = vst.msk [vmem:[#allocation5 + $0x18] sm:$0xff] %vm401_vm0, %v2058_v1 }
  0x1d PF: > { %v442_v2 = vld [vmem:[%s2710_s0 + $0x18] sm:$0xff]  ;;  %v441_v3 = vld [vmem:[%s2710_s0 + $0x10] sm:$0xff]  ;;  %v440_v4 = vld [vmem:[%s2710_s0 + $0x8] sm:$0xff]  ;;  %v426_v5 = vlaneseq  ;;  %vm499_vm1 = vcmask 130048   ;;  %v2059_v11 = vmov 0.0   ;;  %v2060_v17 = vmov 0  }
  0x1e   : > { %552 = vmatprep.subr.mxu0 %v442_v2  ;;  %1884 = vmatprep.subr.mxu1 %v442_v2  ;;  %v439_v6 = vld [vmem:[%s2710_s0] sm:$0xff]  ;;  %v453_v12 = vld [vmem:[%s2712_s2 + $0x10] sm:$0xff]  ;;  %v444_v15 = vld [vmem:[%s2711_s1 + $0x8] sm:$0xff]  ;;  %p1868_p5 = scmp.ne.s32.totalorder %s2048_s19, 0 }
  0x1f   : > { %553 = vmatpush1.msra.mxu0 %v441_v3  ;;  %1886 = vmatpush1.msra.mxu1 %v441_v3  ;;  %v427_v7 = vand.u32 127, %v426_v5  ;;  %v443_v8 = vld [vmem:[%s2711_s1] sm:$0xff]  ;;  %v448_v16 = vld [vmem:[%s2711_s1 + $0x28] sm:$0xff]  ;;  %v454_v18 = vld [vmem:[%s2712_s2 + $0x18] sm:$0xff] }
  0x20   : > { %554 = vmatprep.subr.mxu0 %v440_v4  ;;  %1885 = vmatprep.subr.mxu1 %v440_v4  ;;  %v447_v9 = vld [vmem:[%s2711_s1 + $0x20] sm:$0xff]  ;;  %v452_v19 = vld [vmem:[%s2712_s2 + $0x8] sm:$0xff]  ;;  %v445_v20 = vld [vmem:[%s2711_s1 + $0x10] sm:$0xff] }
  0x21   : > { %555 = vmatpush1.msra.mxu0 %v439_v6  ;;  %1887 = vmatpush1.msra.mxu1 %v439_v6  ;;  %v428_v10 = vadd.s32 128, %v427_v7  ;;  %v451_v13 = vld [vmem:[%s2712_s2] sm:$0xff]  ;;  %v449_v21 = vld [vmem:[%s2711_s1 + $0x30] sm:$0xff]  ;;  %v456_v22 = vld [vmem:[%s2712_s2 + $0x28] sm:$0xff] }
  0x22   : > { %588 = vmatprep.mubr.f32.mxu0 %v2059_v11  ;;  %612 = vmatprep.mubr.f32.mxu1 %v2059_v11  ;;  %v455_v23 = vld [vmem:[%s2712_s2 + $0x20] sm:$0xff]  ;;  %v446_v24 = vld [vmem:[%s2711_s1 + $0x18] sm:$0xff]  ;;  %v457_v27 = vld [vmem:[%s2712_s2 + $0x30] sm:$0xff] }
  0x23   : > { %vm434_vm2 = vcmp.lt.s32.totalorder %v428_v10, 200  ;;  %1860 = vmatmul.mubr.msk.f32.vlgmr.msra.gmra.mxu0 %vm499_vm1, %v443_v8  ;;  %1864 = vmatmul.mubr.msk.f32.vlgmr.msra.gmra.mxu1 %vm499_vm1, %v447_v9  ;;  %v450_v25 = vld [vmem:[%s2711_s1 + $0x38] sm:$0xff] }
  0x24   : > { %v2204_v14 = vsel %vm434_vm2, 1.0, %v2059_v11  ;;  %594 = vmatprep.mubr.f32.mxu0 %v2059_v11  ;;  %618 = vmatprep.mubr.f32.mxu1 %v2059_v11  ;;  %v458_v26 = vld [vmem:[%s2712_s2 + $0x38] sm:$0xff] }
  0x25   : > { %1961 = vset.pattern.permute.xlu1 %v2060_v17  ;;  %1960 = vset.pattern.permute.xlu0 %v2060_v17 }
  0x26   : > { %471 = vperm.xlu1 %1961, %v453_v12   ;;  %461 = vperm.xlu0 %1960, %v451_v13  }
  0x27   : > { %1861 = vmatmul.mubr.msk.f32.gmra.mxu0 %vm499_vm1, %v444_v15  ;;  %1865 = vmatmul.mubr.msk.f32.gmra.mxu1 %vm499_vm1, %v448_v16 }
  0x28   : > { %600 = vmatprep.mubr.f32.mxu0 %v2059_v11  ;;  %624 = vmatprep.mubr.f32.mxu1 %v2059_v11 }
  0x2a   : > { %476 = vperm.xlu1 %1961, %v454_v18   ;;  %466 = vperm.xlu0 %1960, %v452_v19  }
  0x2b   : > { %1862 = vmatmul.mubr.msk.f32.gmra.mxu0 %vm499_vm1, %v445_v20  ;;  %1866 = vmatmul.mubr.msk.f32.gmra.mxu1 %vm499_vm1, %v449_v21 }
  0x2c   : > { %606 = vmatprep.mubr.f32.mxu0 %v2059_v11  ;;  %630 = vmatprep.mubr.f32.mxu1 %v2059_v11 }
  0x2e   : > { %486 = vperm.xlu1 %1961, %v456_v22   ;;  %481 = vperm.xlu0 %1960, %v455_v23  }
  0x2f   : > { %1863 = vmatmul.mubr.msk.f32.gmra.mxu0 %vm499_vm1, %v446_v24  ;;  %1867 = vmatmul.mubr.msk.f32.gmra.mxu1 %vm499_vm1, %v450_v25 }
  0x32   : > { %496 = vperm.xlu1 %1961, %v458_v26   ;;  %491 = vperm.xlu0 %1960, %v457_v27  }
  0xa1   : > { %v462_v28 = vpop.permute.xlu0 %461  ;;  %v472_v29 = vpop.permute.xlu1 %471 }
  0xa5   : > { %v467_v30 = vpop.permute.xlu0 %466  ;;  %v477_v31 = vpop.permute.xlu1 %476 }
  0xa9   : > { %v482_v32 = vpop.permute.xlu0 %481  ;;  %v487_v39 = vpop.permute.xlu1 %486 }
  0xad   : > { %v492_v52 = vpop.permute.xlu0 %491  ;;  %v497_v1 = vpop.permute.xlu1 %496 }
  0xe3   : > { %v590_v33 = vpop.f32.mrf.mxu0  ;;  %v614_v34 = vpop.f32.mrf.mxu1 }
  0xe4   : > { %v591_v35 = vadd.f32 %v590_v33, %v462_v28  ;;  %v615_v36 = vadd.f32 %v614_v34, %v482_v32 }
  0xe5   : > { %v592_v37 = vpop.f32.mrf.mxu0  ;;  %v616_v38 = vpop.f32.mrf.mxu1 }
  0xe6   : > { %v2248_v40 = vmax.f32 %v591_v35, 0.0  ;;  %v2250_v41 = vmax.f32 %v615_v36, 0.0  ;;  %v593_v42 = vadd.f32 %v592_v37, %v462_v28  ;;  %v617_v43 = vadd.f32 %v616_v38, %v482_v32 }
  0xe7   : > { %v596_v44 = vpop.f32.mrf.mxu0  ;;  %v620_v45 = vpop.f32.mrf.mxu1 }
  0xe8   : > { %v2252_v46 = vmax.f32 %v593_v42, 0.0  ;;  %v2254_v47 = vmax.f32 %v617_v43, 0.0  ;;  %v597_v48 = vadd.f32 %v596_v44, %v467_v30  ;;  %v621_v49 = vadd.f32 %v620_v45, %v487_v39 }
  0xe9   : > { %v598_v50 = vpop.f32.mrf.mxu0  ;;  %v622_v51 = vpop.f32.mrf.mxu1 }
  0xea   : > { %v2256_v53 = vmax.f32 %v597_v48, 0.0  ;;  %v2258_v54 = vmax.f32 %v621_v49, 0.0  ;;  %v599_v55 = vadd.f32 %v598_v50, %v467_v30  ;;  %v623_v56 = vadd.f32 %v622_v51, %v487_v39 }
  0xeb   : > { %v602_v57 = vpop.f32.mrf.mxu0  ;;  %v626_v58 = vpop.f32.mrf.mxu1 }
  0xec   : > { %v2260_v59 = vmax.f32 %v599_v55, 0.0  ;;  %v2262_v60 = vmax.f32 %v623_v56, 0.0  ;;  %v603_v61 = vadd.f32 %v602_v57, %v472_v29  ;;  %v627_v62 = vadd.f32 %v626_v58, %v492_v52 }
  0xed   : > { %v604_v63 = vpop.f32.mrf.mxu0  ;;  %v628_v0 = vpop.f32.mrf.mxu1 }
  0xee   : > { %v2264_v2 = vmax.f32 %v603_v61, 0.0  ;;  %v2266_v3 = vmax.f32 %v627_v62, 0.0  ;;  %v605_v4 = vadd.f32 %v604_v63, %v472_v29  ;;  %v629_v6 = vadd.f32 %v628_v0, %v492_v52 }
  0xef   : > { %v608_v7 = vpop.f32.mrf.mxu0  ;;  %v632_v8 = vpop.f32.mrf.mxu1 }
  0xf0   : > { %v2268_v9 = vmax.f32 %v605_v4, 0.0  ;;  %v2270_v10 = vmax.f32 %v629_v6, 0.0  ;;  %v609_v11 = vadd.f32 %v608_v7, %v477_v31  ;;  %v633_v12 = vadd.f32 %v632_v8, %v497_v1  ;;  %655 = sbr.rel (%p1868_p5) target bundleno = 418 (0x1a2), region = 72 }
  0xf1   : > { %v610_v13 = vpop.f32.mrf.mxu0  ;;  %v634_v15 = vpop.f32.mrf.mxu1 }
  0xf2   : > { %v2272_v16 = vmax.f32 %v609_v11, 0.0  ;;  %v2274_v17 = vmax.f32 %v633_v12, 0.0  ;;  %v611_v18 = vadd.f32 %v610_v13, %v477_v31  ;;  %v635_v19 = vadd.f32 %v634_v15, %v497_v1 }
  0xf4   : > { %v2276_v20 = vmax.f32 %v611_v18, 0.0  ;;  %v2278_v21 = vmax.f32 %v635_v19, 0.0 }
  0xf5   : > { %v661_v22 = vmul.f32 %v2204_v14, %v2268_v9  ;;  %v657_v23 = vmul.f32 %v2204_v14, %v2252_v46  ;;  %v659_v25 = vmul.f32 %v2204_v14, %v2260_v59  ;;  %v667_v28 = vmul.f32 %v2204_v14, %v2262_v60  ;;  %v674_v12 = vld [vmem:[#allocation2 + $0x10] sm:$0xff]  ;;  %v672_v13 = vld [vmem:[#allocation2] sm:$0xff] }
  0xf6   : > { %v663_v24 = vmul.f32 %v2204_v14, %v2276_v20  ;;  %v665_v31 = vmul.f32 %v2204_v14, %v2254_v47  ;;  %v671_v32 = vmul.f32 %v2204_v14, %v2278_v21  ;;  %v669_v33 = vmul.f32 %v2204_v14, %v2270_v10 }
  0xf7   : > { %v686_v26 = vadd.f32 %v661_v22, %v2264_v2  ;;  %v680_v27 = vadd.f32 %v657_v23, %v2248_v40  ;;  %v683_v30 = vadd.f32 %v659_v25, %v2256_v53  ;;  %v695_v34 = vadd.f32 %v667_v28, %v2258_v54 }
  0xf8   : > { %v689_v29 = vadd.f32 %v663_v24, %v2272_v16  ;;  %v692_v35 = vadd.f32 %v665_v31, %v2250_v41  ;;  %v701_v36 = vadd.f32 %v671_v32, %v2274_v17  ;;  %v698_v37 = vadd.f32 %v669_v33, %v2266_v3 }
  0xf9   : > { %687 = vadd.xlane.f32.xlu1 %v686_v26  ;;  %681 = vadd.xlane.f32.xlu0 %v680_v27  ;;  %v731_v38 = vmul.f32 %v2256_v53, %v2256_v53  ;;  %v732_v39 = vmul.f32 %v659_v25, %v2260_v59  ;;  %v729_v42 = vmul.f32 %v2248_v40, %v2248_v40  ;;  %vm787_vm3 = vcmp.lt.s32.totalorder %v426_v5, 256 }
  0xfa   : > { %v730_v43 = vmul.f32 %v657_v23, %v2252_v46  ;;  %v735_v44 = vmul.f32 %v2272_v16, %v2272_v16  ;;  %v736_v45 = vmul.f32 %v663_v24, %v2276_v20  ;;  %v733_v48 = vmul.f32 %v2264_v2, %v2264_v2  ;;  %v675_v23 = vld [vmem:[#allocation2 + $0x18] sm:$0xff]  ;;  %v673_v24 = vld [vmem:[#allocation2 + $0x8] sm:$0xff] }
  0xfb   : > { %v748_v49 = vadd.f32 %v732_v39, %v731_v38  ;;  %v734_v51 = vmul.f32 %v661_v22, %v2268_v9  ;;  %v739_v52 = vmul.f32 %v2258_v54, %v2258_v54  ;;  %v740_v55 = vmul.f32 %v667_v28, %v2262_v60 }
  0xfc   : > { %v745_v50 = vadd.f32 %v730_v43, %v729_v42  ;;  %v737_v56 = vmul.f32 %v2250_v41, %v2250_v41  ;;  %v738_v57 = vmul.f32 %v665_v31, %v2254_v47  ;;  %v754_v58 = vadd.f32 %v736_v45, %v735_v44  ;;  %v722_v43 = vld [vmem:[#allocation3 + $0x8] sm:$0xff]  ;;  %v721_v44 = vld [vmem:[#allocation3] sm:$0xff] }
  0xfd   : > { %690 = vadd.xlane.f32.xlu1 %v689_v29  ;;  %684 = vadd.xlane.f32.xlu0 %v683_v30  ;;  %v751_v61 = vadd.f32 %v734_v51, %v733_v48  ;;  %v760_v62 = vadd.f32 %v740_v55, %v739_v52  ;;  %v743_v0 = vmul.f32 %v2274_v17, %v2274_v17  ;;  %v2061_v11 = vmov 0.0   ;;  %v677_v29 = vld [vmem:[#allocation2 + $0x28] sm:$0xff]  ;;  %v676_v30 = vld [vmem:[#allocation2 + $0x20] sm:$0xff]  ;;  %v724_v51 = vld [vmem:[#allocation3 + $0x18] sm:$0xff] }
  0xfe   : > { %v757_v63 = vadd.f32 %v738_v57, %v737_v56  ;;  %v744_v1 = vmul.f32 %v671_v32, %v2278_v21  ;;  %v741_v4 = vmul.f32 %v2266_v3, %v2266_v3  ;;  %v742_v6 = vmul.f32 %v669_v33, %v2270_v10  ;;  %789 = vst.msk [vmem:[#allocation7] sm:$0x3] %vm787_vm3, %v2061_v11  ;;  %v723_v52 = vld [vmem:[#allocation3 + $0x10] sm:$0xff] }
  0xff   : > { %vm712_vm4 = vcmask 7168  }
 0x100   : > { %v766_v7 = vadd.f32 %v744_v1, %v743_v0  ;;  %v763_v8 = vadd.f32 %v742_v6, %v741_v4  ;;  %v728_v6 = vld [vmem:[#allocation3 + $0x38] sm:$0xff] }
 0x101   : > { %696 = vadd.xlane.f32.xlu1 %v695_v34  ;;  %693 = vadd.xlane.f32.xlu0 %v692_v35  ;;  %v679_v35 = vld [vmem:[#allocation2 + $0x38] sm:$0xff] }
 0x105   : > { %702 = vadd.xlane.f32.xlu1 %v701_v36  ;;  %699 = vadd.xlane.f32.xlu0 %v698_v37  ;;  %v678_v36 = vld [vmem:[#allocation2 + $0x30] sm:$0xff] }
 0x109   : > { %749 = vadd.xlane.f32.xlu1 %v748_v49  ;;  %746 = vadd.xlane.f32.xlu0 %v745_v50 }
 0x10d   : > { %755 = vadd.xlane.f32.xlu1 %v754_v58  ;;  %752 = vadd.xlane.f32.xlu0 %v751_v61  ;;  %v726_v61 = vld [vmem:[#allocation3 + $0x28] sm:$0xff] }
 0x111   : > { %761 = vadd.xlane.f32.xlu1 %v760_v62  ;;  %758 = vadd.xlane.f32.xlu0 %v757_v63  ;;  %v725_v62 = vld [vmem:[#allocation3 + $0x20] sm:$0xff] }
 0x115   : > { %767 = vadd.xlane.f32.xlu1 %v766_v7  ;;  %764 = vadd.xlane.f32.xlu0 %v763_v8  ;;  %v727_v7 = vld [vmem:[#allocation3 + $0x30] sm:$0xff] }
 0x182   : > { %v688_v15 = vpop.xlane.xlu1 %687  ;;  %v682_v18 = vpop.xlane.xlu0 %681 }
 0x183   : > { %v706_v19 = vadd.f32 %v688_v15, %v674_v12  ;;  %v704_v22 = vadd.f32 %v682_v18, %v672_v13 }
 0x185   : > { %715 = vst.msk [vmem:[#allocation2 + $0x10] sm:$0xff] %vm712_vm4, %v706_v19  ;;  %713 = vst.msk [vmem:[#allocation2] sm:$0xff] %vm712_vm4, %v704_v22 }
 0x186   : > { %v691_v25 = vpop.xlane.xlu1 %690  ;;  %v685_v26 = vpop.xlane.xlu0 %684 }
 0x187   : > { %v707_v27 = vadd.f32 %v691_v25, %v675_v23  ;;  %v705_v28 = vadd.f32 %v685_v26, %v673_v24 }
 0x189   : > { %716 = vst.msk [vmem:[#allocation2 + $0x18] sm:$0xff] %vm712_vm4, %v707_v27  ;;  %714 = vst.msk [vmem:[#allocation2 + $0x8] sm:$0xff] %vm712_vm4, %v705_v28 }
 0x18a   : > { %v697_v31 = vpop.xlane.xlu1 %696  ;;  %v694_v32 = vpop.xlane.xlu0 %693 }
 0x18b   : > { %v709_v33 = vadd.f32 %v697_v31, %v677_v29  ;;  %v708_v34 = vadd.f32 %v694_v32, %v676_v30 }
 0x18d   : > { %718 = vst.msk [vmem:[#allocation2 + $0x28] sm:$0xff] %vm712_vm4, %v709_v33  ;;  %717 = vst.msk [vmem:[#allocation2 + $0x20] sm:$0xff] %vm712_vm4, %v708_v34 }
 0x18e   : > { %v703_v37 = vpop.xlane.xlu1 %702  ;;  %v700_v38 = vpop.xlane.xlu0 %699 }
 0x18f   : > { %v711_v39 = vadd.f32 %v703_v37, %v679_v35  ;;  %v710_v42 = vadd.f32 %v700_v38, %v678_v36 }
 0x191   : > { %720 = vst.msk [vmem:[#allocation2 + $0x38] sm:$0xff] %vm712_vm4, %v711_v39  ;;  %719 = vst.msk [vmem:[#allocation2 + $0x30] sm:$0xff] %vm712_vm4, %v710_v42 }
 0x192   : > { %v750_v45 = vpop.xlane.xlu1 %749  ;;  %v747_v48 = vpop.xlane.xlu0 %746 }
 0x193   : > { %v770_v49 = vadd.f32 %v750_v45, %v722_v43  ;;  %v769_v50 = vadd.f32 %v747_v48, %v721_v44 }
 0x195   : > { %778 = vst.msk [vmem:[#allocation3 + $0x8] sm:$0xff] %vm712_vm4, %v770_v49  ;;  %777 = vst.msk [vmem:[#allocation3] sm:$0xff] %vm712_vm4, %v769_v50 }
 0x196   : > { %v756_v55 = vpop.xlane.xlu1 %755  ;;  %v753_v56 = vpop.xlane.xlu0 %752 }
 0x197   : > { %v772_v57 = vadd.f32 %v756_v55, %v724_v51  ;;  %v771_v58 = vadd.f32 %v753_v56, %v723_v52 }
 0x199   : > { %780 = vst.msk [vmem:[#allocation3 + $0x18] sm:$0xff] %vm712_vm4, %v772_v57  ;;  %779 = vst.msk [vmem:[#allocation3 + $0x10] sm:$0xff] %vm712_vm4, %v771_v58 }
 0x19a   : > { %v762_v63 = vpop.xlane.xlu1 %761  ;;  %v759_v0 = vpop.xlane.xlu0 %758 }
 0x19b   : > { %v774_v1 = vadd.f32 %v762_v63, %v726_v61  ;;  %v773_v4 = vadd.f32 %v759_v0, %v725_v62 }
 0x19d   : > { %782 = vst.msk [vmem:[#allocation3 + $0x28] sm:$0xff] %vm712_vm4, %v774_v1  ;;  %781 = vst.msk [vmem:[#allocation3 + $0x20] sm:$0xff] %vm712_vm4, %v773_v4 }
 0x19e   : > { %v768_v8 = vpop.xlane.xlu1 %767  ;;  %v765_v11 = vpop.xlane.xlu0 %764 }
 0x19f   : > { %v776_v12 = vadd.f32 %v768_v8, %v728_v6  ;;  %v775_v13 = vadd.f32 %v765_v11, %v727_v7 }
 0x1a1   : > { %784 = vst.msk [vmem:[#allocation3 + $0x38] sm:$0xff] %vm712_vm4, %v776_v12  ;;  %783 = vst.msk [vmem:[#allocation3 + $0x30] sm:$0xff] %vm712_vm4, %v775_v13 }
 0x1a2 PF: > { %p1869_p6 = scmp.ne.s32.totalorder %s2048_s19, 1 }
 0x1a4   : > { %793 = sbr.rel (%p1869_p6) target bundleno = 970 (0x3ca), region = 76 }
 0x1a9   : > { %v801_v15 = vld [vmem:[#allocation2 + $0x38] sm:$0xff]  ;;  %v2062_v19 = vmov 0   ;;  %v799_v24 = vld [vmem:[#allocation2 + $0x28] sm:$0xff]  ;;  %v800_v28 = vld [vmem:[#allocation2 + $0x30] sm:$0xff]  ;;  %vm1223_vm5 = vcmp.lt.s32.totalorder %v426_v5, 256  ;;  %vm1046_vm6 = vcmask 523264  }
 0x1aa   : > { %v817_v18 = vld [vmem:[#allocation3 + $0x38] sm:$0xff]  ;;  %1963 = vset.pattern.permute.xlu1 %v2062_v19  ;;  %1962 = vset.pattern.permute.xlu0 %v2062_v19  ;;  %v2347_v22 = vmul.f32 0.005, %v801_v15  ;;  %v815_v25 = vld [vmem:[#allocation3 + $0x28] sm:$0xff]  ;;  %v2349_v26 = vmul.f32 0.005, %v799_v24 }
 0x1ab   : > { %v825_v23 = vmul.f32 0.005, %v817_v18  ;;  %v823_v27 = vmul.f32 0.005, %v815_v25  ;;  %v2353_v30 = vmul.f32 0.005, %v800_v28 }
 0x1ac   : > { %v833_v29 = vmul.f32 %v2347_v22, %v2347_v22  ;;  %v816_v31 = vld [vmem:[#allocation3 + $0x30] sm:$0xff]  ;;  %v798_v32 = vld [vmem:[#allocation2 + $0x20] sm:$0xff]  ;;  %v831_v33 = vmul.f32 %v2349_v26, %v2349_v26  ;;  %v797_v42 = vld [vmem:[#allocation2 + $0x18] sm:$0xff]  ;;  %vm1184_vm7 = vcmask 7168  }
 0x1ad   : > { %v824_v34 = vmul.f32 0.005, %v816_v31  ;;  %v2357_v35 = vmul.f32 0.005, %v798_v32  ;;  %v814_v36 = vld [vmem:[#allocation3 + $0x20] sm:$0xff]  ;;  %v832_v38 = vmul.f32 %v2353_v30, %v2353_v30  ;;  %v813_v43 = vld [vmem:[#allocation3 + $0x18] sm:$0xff] }
 0x1ae   : > { %v841_v37 = vsub.f32 %v825_v23, %v833_v29  ;;  %v822_v39 = vmul.f32 0.005, %v814_v36  ;;  %v839_v44 = vsub.f32 %v823_v27, %v831_v33  ;;  %v2363_v48 = vmul.f32 0.005, %v797_v42  ;;  %v796_v52 = vld [vmem:[#allocation2 + $0x10] sm:$0xff]  ;;  %v795_v1 = vld [vmem:[#allocation2 + $0x8] sm:$0xff] }
 0x1af   : > { %v830_v45 = vmul.f32 %v2357_v35, %v2357_v35  ;;  %v821_v49 = vmul.f32 0.005, %v813_v43  ;;  %v840_v51 = vsub.f32 %v824_v34, %v832_v38  ;;  %v2367_v58 = vmul.f32 0.005, %v796_v52  ;;  %v812_v61 = vld [vmem:[#allocation3 + $0x10] sm:$0xff]  ;;  %v811_v11 = vld [vmem:[#allocation3 + $0x8] sm:$0xff] }
 0x1b0   : > { %v849_v50 = vmax.f32 %v841_v37, 0.0  ;;  %v847_v55 = vmax.f32 %v839_v44, 0.0  ;;  %v829_v57 = vmul.f32 %v2363_v48, %v2363_v48  ;;  %v820_v0 = vmul.f32 0.005, %v812_v61  ;;  %v794_v24 = vld [vmem:[#allocation2] sm:$0xff]  ;;  %v873_v42 = vld [vmem:[%s2713_s3 + $0x38] sm:$0xff] }
 0x1b1   : > { %v838_v56 = vsub.f32 %v822_v39, %v830_v45  ;;  %v848_v63 = vmax.f32 %v840_v51, 0.0  ;;  %v828_v8 = vmul.f32 %v2367_v58, %v2367_v58  ;;  %v2371_v13 = vmul.f32 0.005, %v795_v1  ;;  %v810_v25 = vld [vmem:[#allocation3] sm:$0xff]  ;;  %v871_v43 = vld [vmem:[%s2713_s3 + $0x28] sm:$0xff] }
 0x1b2   : > { %v857_v62 = vadd.f32 1e-05, %v849_v50  ;;  %v855_v4 = vadd.f32 1e-05, %v847_v55  ;;  %v837_v7 = vsub.f32 %v821_v49, %v829_v57  ;;  %v819_v15 = vmul.f32 0.005, %v811_v11 }
 0x1b3   : > { %v846_v6 = vmax.f32 %v838_v56, 0.0  ;;  %v856_v12 = vadd.f32 1e-05, %v848_v63  ;;  %v836_v23 = vsub.f32 %v820_v0, %v828_v8  ;;  %v827_v27 = vmul.f32 %v2371_v13, %v2371_v13  ;;  %v872_v49 = vld [vmem:[%s2713_s3 + $0x30] sm:$0xff]  ;;  %v870_v55 = vld [vmem:[%s2713_s3 + $0x20] sm:$0xff] }
 0x1b4   : > { %1964 = vrsqrt.f32 %v857_v62  ;;  %v845_v19 = vmax.f32 %v837_v7, 0.0  ;;  %v2375_v28 = vmul.f32 0.005, %v794_v24  ;;  %v818_v29 = vmul.f32 0.005, %v810_v25  ;;  %v888_v0 = vld [vmem:[%s2714_s4 + $0x30] sm:$0xff] }
 0x1b5   : > { %1966 = vrsqrt.f32 %v855_v4  ;;  %v854_v18 = vadd.f32 1e-05, %v846_v6  ;;  %v835_v32 = vsub.f32 %v819_v15, %v827_v27  ;;  %v844_v34 = vmax.f32 %v836_v23, 0.0  ;;  %v869_v6 = vld [vmem:[%s2713_s3 + $0x18] sm:$0xff]  ;;  %v887_v15 = vld [vmem:[%s2714_s4 + $0x28] sm:$0xff]  ;;  %v868_v24 = vld [vmem:[%s2713_s3 + $0x10] sm:$0xff] }
 0x1b6   : > { %1968 = vrsqrt.f32 %v856_v12  ;;  %v853_v31 = vadd.f32 1e-05, %v845_v19  ;;  %v826_v33 = vmul.f32 %v2375_v28, %v2375_v28 }
 0x1b7   : > { %1970 = vrsqrt.f32 %v854_v18  ;;  %v843_v37 = vmax.f32 %v835_v32, 0.0  ;;  %v852_v38 = vadd.f32 1e-05, %v844_v34  ;;  %v866_v34 = vld [vmem:[%s2713_s3] sm:$0xff] }
 0x1b8   : > { %1972 = vrsqrt.f32 %v853_v31  ;;  %v834_v36 = vsub.f32 %v818_v29, %v826_v33  ;;  %v867_v33 = vld [vmem:[%s2713_s3 + $0x8] sm:$0xff] }
 0x1b9   : > { %v851_v44 = vadd.f32 1e-05, %v843_v37  ;;  %1974 = vrsqrt.f32 %v852_v38  ;;  %v884_v38 = vld [vmem:[%s2714_s4 + $0x10] sm:$0xff] }
 0x1ba   : > { %v842_v39 = vmax.f32 %v834_v36, 0.0 }
 0x1bb   : > { %1976 = vrsqrt.f32 %v851_v44  ;;  %v883_v44 = vld [vmem:[%s2714_s4 + $0x8] sm:$0xff] }
 0x1bc   : > { %v850_v50 = vadd.f32 1e-05, %v842_v39 }
 0x1be   : > { %1978 = vrsqrt.f32 %v850_v50 }
 0x1c1   : > { %v1965_v45 = vpop.eup %1964 }
 0x1c2   : > { %v1967_v51 = vpop.eup %1966  ;;  %v881_v52 = vmul.f32 %v1965_v45, %v873_v42 }
 0x1c3   : > { %v1969_v56 = vpop.eup %1968  ;;  %v879_v57 = vmul.f32 %v1967_v51, %v871_v43  ;;  %v2063_v51 = vmov 0.0  }
 0x1c4   : > { %v1971_v61 = vpop.eup %1970  ;;  %943 = vperm.xlu0 %1962, %v881_v52   ;;  %v880_v62 = vmul.f32 %v1969_v56, %v872_v49  ;;  %v897_v11 = vmul.f32 %v881_v52, %v2347_v22  ;;  %v886_v22 = vld [vmem:[%s2714_s4 + $0x20] sm:$0xff]  ;;  %1123 = vmatprep.mubr.f32.mxu0 %v2063_v51  ;;  %1225 = vst.msk [vmem:[#allocation7] sm:$0x3] %vm1223_vm5, %v2063_v51  ;;  %v1024_v52 = vld [vmem:[%s2716_s6 + $0x10] sm:$0xff] }
 0x1c5   : > { %933 = vperm.xlu1 %1963, %v879_v57   ;;  %v878_v63 = vmul.f32 %v1971_v61, %v870_v55  ;;  %v1973_v1 = vpop.eup %1972  ;;  %v895_v7 = vmul.f32 %v879_v57, %v2349_v26  ;;  %1135 = vmatprep.mubr.f32.mxu1 %v2063_v51  ;;  %v1025_v55 = vld [vmem:[%s2716_s6 + $0x18] sm:$0xff] }
 0x1c6   : > { %v896_v4 = vmul.f32 %v880_v62, %v2353_v30  ;;  %v877_v12 = vmul.f32 %v1973_v1, %v869_v6  ;;  %v889_v30 = vld [vmem:[%s2714_s4 + $0x38] sm:$0xff]  ;;  %v1975_v23 = vpop.eup %1974 }
 0x1c7   : > { %v903_v18 = vsub.f32 %v887_v15, %v895_v7  ;;  %v894_v19 = vmul.f32 %v878_v63, %v2357_v35  ;;  %v905_v26 = vsub.f32 %v889_v30, %v897_v11  ;;  %v876_v31 = vmul.f32 %v1975_v23, %v868_v24  ;;  %v885_v35 = vld [vmem:[%s2714_s4 + $0x18] sm:$0xff] }
 0x1c8   : > { %938 = vperm.xlu0 %1962, %v880_v62   ;;  %v904_v8 = vsub.f32 %v888_v0, %v896_v4  ;;  %v893_v27 = vmul.f32 %v877_v12, %v2363_v48  ;;  %v1977_v29 = vpop.eup %1976 }
 0x1c9   : > { %928 = vperm.xlu1 %1963, %v878_v63   ;;  %v902_v25 = vsub.f32 %v886_v22, %v894_v19  ;;  %v892_v48 = vmul.f32 %v876_v31, %v2367_v58  ;;  %v875_v37 = vmul.f32 %v1977_v29, %v867_v33  ;;  %v882_v58 = vld [vmem:[%s2714_s4] sm:$0xff] }
 0x1ca   : > { %v901_v36 = vsub.f32 %v885_v35, %v893_v27 }
 0x1cb   : > { %v1979_v32 = vpop.eup %1978  ;;  %v900_v42 = vsub.f32 %v884_v38, %v892_v48  ;;  %v891_v43 = vmul.f32 %v875_v37, %v2371_v13  ;;  %v1022_v13 = vld [vmem:[%s2716_s6] sm:$0xff] }
 0x1cc   : > { %994 = vperm.xlu0 %1962, %v904_v8   ;;  %v874_v39 = vmul.f32 %v1979_v32, %v866_v34 }
 0x1cd   : > { %923 = vperm.xlu1 %1963, %v877_v12   ;;  %v899_v49 = vsub.f32 %v883_v44, %v891_v43 }
 0x1ce   : > { %v890_v45 = vmul.f32 %v874_v39, %v2375_v28  ;;  %v1023_v28 = vld [vmem:[%s2716_s6 + $0x8] sm:$0xff] }
 0x1d0   : > { %989 = vperm.xlu0 %1962, %v903_v18   ;;  %v898_v50 = vsub.f32 %v882_v58, %v890_v45 }
 0x1d1   : > { %999 = vperm.xlu1 %1963, %v905_v26  }
 0x1d4   : > { %984 = vperm.xlu0 %1962, %v902_v25  }
 0x1d5   : > { %918 = vperm.xlu1 %1963, %v876_v31  }
 0x1d8   : > { %979 = vperm.xlu0 %1962, %v901_v36  }
 0x1d9   : > { %913 = vperm.xlu1 %1963, %v875_v37  }
 0x1dc   : > { %974 = vperm.xlu0 %1962, %v900_v42  }
 0x1dd   : > { %908 = vperm.xlu1 %1963, %v874_v39  }
 0x1e0   : > { %969 = vperm.xlu0 %1962, %v899_v49  }
 0x1e1   : > { %964 = vperm.xlu1 %1963, %v898_v50  }
 0x1e4   : > { %1028 = vperm.xlu0 %1962, %v1022_v13  }
 0x1e5   : > { %1033 = vperm.xlu1 %1963, %v1023_v28  }
 0x1e8   : > { %1038 = vperm.xlu0 %1962, %v1024_v52  }
 0x1e9   : > { %1043 = vperm.xlu1 %1963, %v1025_v55  }
 0x23f   : > { %v944_v56 = vpop.permute.xlu0 %943 }
 0x240   : > { %v934_v57 = vpop.permute.xlu1 %933  ;;  %v960_v1 = vmul.f32 %v944_v56, %v2274_v17  ;;  %v961_v4 = vmul.f32 %v944_v56, %v2278_v21 }
 0x241   : > { %v957_v30 = vmul.f32 %v934_v57, %v2262_v60  ;;  %v956_v26 = vmul.f32 %v934_v57, %v2258_v54 }
 0x243   : > { %v939_v61 = vpop.permute.xlu0 %938 }
 0x244   : > { %v929_v62 = vpop.permute.xlu1 %928  ;;  %v959_v8 = vmul.f32 %v939_v61, %v2270_v10  ;;  %v958_v15 = vmul.f32 %v939_v61, %v2266_v3 }
 0x245   : > { %v954_v24 = vmul.f32 %v929_v62, %v2250_v41  ;;  %v955_v25 = vmul.f32 %v929_v62, %v2254_v47  ;;  %v1018_v62 = vld [vmem:[%s2715_s5] sm:$0xff] }
 0x247   : > { %v995_v63 = vpop.permute.xlu0 %994 }
 0x248   : > { %v924_v0 = vpop.permute.xlu1 %923  ;;  %v1015_v18 = vadd.f32 %v995_v63, %v959_v8  ;;  %v1014_v22 = vadd.f32 %v995_v63, %v958_v15  ;;  %v1020_v63 = vld [vmem:[%s2715_s5 + $0x10] sm:$0xff] }
 0x249   : > { %v952_v29 = vmul.f32 %v924_v0, %v2272_v16  ;;  %v953_v31 = vmul.f32 %v924_v0, %v2276_v20  ;;  %v1019_v0 = vld [vmem:[%s2715_s5 + $0x8] sm:$0xff] }
 0x24b   : > { %v990_v6 = vpop.permute.xlu0 %989 }
 0x24c   : > { %v1000_v7 = vpop.permute.xlu1 %999  ;;  %v1013_v27 = vadd.f32 %v990_v6, %v957_v30  ;;  %v1012_v35 = vadd.f32 %v990_v6, %v956_v26 }
 0x24d   : > { %v1017_v11 = vadd.f32 %v1000_v7, %v961_v4  ;;  %v1016_v12 = vadd.f32 %v1000_v7, %v960_v1  ;;  %v1021_v1 = vld [vmem:[%s2715_s5 + $0x18] sm:$0xff] }
 0x24f   : > { %1075 = vmatprep.subr.mxu0 %v1017_v11  ;;  %1888 = vmatprep.subr.mxu1 %v1017_v11  ;;  %v985_v19 = vpop.permute.xlu0 %984 }
 0x250   : > { %1076 = vmatpush1.msra.mxu0 %v1016_v12  ;;  %1896 = vmatpush1.msra.mxu1 %v1016_v12  ;;  %v919_v23 = vpop.permute.xlu1 %918  ;;  %v1011_v32 = vadd.f32 %v985_v19, %v955_v25  ;;  %v1010_v34 = vadd.f32 %v985_v19, %v954_v24 }
 0x251   : > { %1077 = vmatprep.subr.mxu0 %v1015_v18  ;;  %1889 = vmatprep.subr.mxu1 %v1015_v18  ;;  %v950_v38 = vmul.f32 %v919_v23, %v2264_v2  ;;  %v951_v39 = vmul.f32 %v919_v23, %v2268_v9 }
 0x252   : > { %1078 = vmatpush1.msra.mxu0 %v1014_v22  ;;  %1897 = vmatpush1.msra.mxu1 %v1014_v22 }
 0x253   : > { %1079 = vmatprep.subr.mxu0 %v1013_v27  ;;  %1890 = vmatprep.subr.mxu1 %v1013_v27  ;;  %v980_v33 = vpop.permute.xlu0 %979 }
 0x254   : > { %1080 = vmatpush1.msra.mxu0 %v1012_v35  ;;  %1898 = vmatpush1.msra.mxu1 %v1012_v35  ;;  %v1008_v36 = vadd.f32 %v980_v33, %v952_v29  ;;  %v1009_v48 = vadd.f32 %v980_v33, %v953_v31  ;;  %v914_v37 = vpop.permute.xlu1 %913 }
 0x255   : > { %1081 = vmatprep.subr.mxu0 %v1011_v32  ;;  %1891 = vmatprep.subr.mxu1 %v1011_v32  ;;  %v948_v58 = vmul.f32 %v914_v37, %v2256_v53  ;;  %v949_v49 = vmul.f32 %v914_v37, %v2260_v59 }
 0x256   : > { %1082 = vmatpush1.msra.mxu0 %v1010_v34  ;;  %1899 = vmatpush1.msra.mxu1 %v1010_v34 }
 0x257   : > { %1083 = vmatprep.subr.mxu0 %v1009_v48  ;;  %1892 = vmatprep.subr.mxu1 %v1009_v48  ;;  %v975_v42 = vpop.permute.xlu0 %974 }
 0x258   : > { %1084 = vmatpush1.msra.mxu0 %v1008_v36  ;;  %1900 = vmatpush1.msra.mxu1 %v1008_v36  ;;  %v1006_v43 = vadd.f32 %v975_v42, %v950_v38  ;;  %v1007_v44 = vadd.f32 %v975_v42, %v951_v39  ;;  %v909_v45 = vpop.permute.xlu1 %908 }
 0x259   : > { %v947_v13 = vmul.f32 %v909_v45, %v2252_v46  ;;  %v946_v56 = vmul.f32 %v909_v45, %v2248_v40 }
 0x25a   : > { %1085 = vmatprep.subr.mxu0 %v1007_v44  ;;  %1893 = vmatprep.subr.mxu1 %v1007_v44 }
 0x25b   : > { %1086 = vmatpush1.msra.mxu0 %v1006_v43  ;;  %1901 = vmatpush1.msra.mxu1 %v1006_v43  ;;  %v970_v50 = vpop.permute.xlu0 %969 }
 0x25c   : > { %v1004_v28 = vadd.f32 %v970_v50, %v948_v58  ;;  %v1005_v52 = vadd.f32 %v970_v50, %v949_v49  ;;  %v965_v55 = vpop.permute.xlu1 %964 }
 0x25d   : > { %v1003_v57 = vadd.f32 %v965_v55, %v947_v13  ;;  %v1002_v61 = vadd.f32 %v965_v55, %v946_v56 }
 0x25e   : > { %1087 = vmatprep.subr.mxu0 %v1005_v52  ;;  %1894 = vmatprep.subr.mxu1 %v1005_v52 }
 0x25f   : > { %1088 = vmatpush1.msra.mxu0 %v1004_v28  ;;  %1902 = vmatpush1.msra.mxu1 %v1004_v28  ;;  %v1029_v4 = vpop.permute.xlu0 %1028 }
 0x260   : > { %1089 = vmatprep.subr.mxu0 %v1003_v57  ;;  %1895 = vmatprep.subr.mxu1 %v1003_v57  ;;  %v1034_v6 = vpop.permute.xlu1 %1033 }
 0x261   : > { %1090 = vmatpush1.msra.mxu0 %v1002_v61  ;;  %1903 = vmatpush1.msra.mxu1 %v1002_v61 }
 0x262   : > { %1870 = vmatmul.mubr.msk.f32.vlgmr.msra.gmra.mxu0 %vm1046_vm6, %v1018_v62  ;;  %1872 = vmatmul.mubr.msk.f32.vlgmr.msra.gmra.mxu1 %vm1046_vm6, %v1020_v63 }
 0x263   : > { %1129 = vmatprep.mubr.f32.mxu0 %v2063_v51  ;;  %1141 = vmatprep.mubr.f32.mxu1 %v2063_v51  ;;  %v1039_v11 = vpop.permute.xlu0 %1038 }
 0x264   : > { %v1044_v22 = vpop.permute.xlu1 %1043 }
 0x266   : > { %1871 = vmatmul.mubr.msk.f32.gmra.mxu0 %vm1046_vm6, %v1019_v0  ;;  %1873 = vmatmul.mubr.msk.f32.gmra.mxu1 %vm1046_vm6, %v1021_v1 }
 0x322   : > { %v1125_v7 = vpop.f32.mrf.mxu0  ;;  %v1137_v8 = vpop.f32.mrf.mxu1 }
 0x323   : > { %v1126_v12 = vadd.f32 %v1125_v7, %v1029_v4  ;;  %v1138_v33 = vadd.f32 %v1137_v8, %v1039_v11  ;;  %v1189_v7 = vld [vmem:[#allocation5] sm:$0xff] }
 0x324   : > { %v1127_v15 = vpop.f32.mrf.mxu0  ;;  %v1139_v30 = vpop.f32.mrf.mxu1 }
 0x325   : > { %v1128_v18 = vadd.f32 %v1127_v15, %v1029_v4  ;;  %v1140_v51 = vadd.f32 %v1139_v30, %v1039_v11  ;;  %v1148_v23 = vmax.f32 %v1126_v12, 0.0  ;;  %v1152_v45 = vmax.f32 %v1138_v33, 0.0  ;;  %v1166_v30 = vld [vmem:[#allocation4 + $0x10] sm:$0xff] }
 0x326   : > { %v1131_v19 = vpop.f32.mrf.mxu0  ;;  %v1143_v26 = vpop.f32.mrf.mxu1 }
 0x327   : > { %v1149_v24 = vmax.f32 %v1128_v18, 0.0  ;;  %v1153_v25 = vmax.f32 %v1140_v51, 0.0  ;;  %v1193_v34 = vmul.f32 %v1148_v23, %v1148_v23  ;;  %v1132_v48 = vadd.f32 %v1131_v19, %v1034_v6  ;;  %v1165_v18 = vld [vmem:[#allocation4 + $0x8] sm:$0xff] }
 0x328   : > { %v1133_v27 = vpop.f32.mrf.mxu0  ;;  %v1145_v29 = vpop.f32.mrf.mxu1  ;;  %v1144_v58 = vadd.f32 %v1143_v26, %v1044_v22  ;;  %v1197_v56 = vmul.f32 %v1152_v45, %v1152_v45 }
 0x329   : > { %v1157_v31 = vmul.f32 %v2204_v14, %v1149_v24  ;;  %v1134_v35 = vadd.f32 %v1133_v27, %v1034_v6  ;;  %v1146_v32 = vadd.f32 %v1145_v29, %v1044_v22  ;;  %v1161_v38 = vmul.f32 %v2204_v14, %v1153_v25 }
 0x32a   : > { %v1150_v49 = vmax.f32 %v1132_v48, 0.0  ;;  %v1154_v55 = vmax.f32 %v1144_v58, 0.0 }
 0x32b   : > { %v1194_v36 = vmul.f32 %v1157_v31, %v1149_v24  ;;  %v1151_v37 = vmax.f32 %v1134_v35, 0.0  ;;  %v1155_v39 = vmax.f32 %v1146_v32, 0.0  ;;  %v1168_v42 = vadd.f32 %v1157_v31, %v1148_v23  ;;  %v1167_v23 = vld [vmem:[#allocation4 + $0x18] sm:$0xff]  ;;  %v1191_v24 = vld [vmem:[#allocation5 + $0x10] sm:$0xff]  ;;  %v1190_v35 = vld [vmem:[#allocation5 + $0x8] sm:$0xff] }
 0x32c   : > { %v1174_v13 = vadd.f32 %v1161_v38, %v1152_v45  ;;  %v1198_v28 = vmul.f32 %v1161_v38, %v1153_v25  ;;  %v1195_v63 = vmul.f32 %v1150_v49, %v1150_v49  ;;  %v1199_v4 = vmul.f32 %v1154_v55, %v1154_v55 }
 0x32d   : > { %v1159_v43 = vmul.f32 %v2204_v14, %v1151_v37  ;;  %v1201_v44 = vadd.f32 %v1194_v36, %v1193_v34  ;;  %1169 = vadd.xlane.f32.xlu0 %v1168_v42  ;;  %v1163_v50 = vmul.f32 %v2204_v14, %v1155_v39  ;;  %v1164_v14 = vld [vmem:[#allocation4] sm:$0xff]  ;;  %v1192_v34 = vld [vmem:[#allocation5 + $0x18] sm:$0xff] }
 0x32e   : > { %v1207_v62 = vadd.f32 %v1198_v28, %v1197_v56 }
 0x32f   : > { %1202 = vadd.xlane.f32.xlu1 %v1201_v44  ;;  %v1171_v52 = vadd.f32 %v1159_v43, %v1150_v49  ;;  %v1196_v57 = vmul.f32 %v1159_v43, %v1151_v37  ;;  %v1177_v61 = vadd.f32 %v1163_v50, %v1154_v55  ;;  %v1200_v0 = vmul.f32 %v1163_v50, %v1155_v39 }
 0x331   : > { %1175 = vadd.xlane.f32.xlu0 %v1174_v13  ;;  %v1204_v1 = vadd.f32 %v1196_v57, %v1195_v63  ;;  %v1210_v6 = vadd.f32 %v1200_v0, %v1199_v4 }
 0x333   : > { %1172 = vadd.xlane.f32.xlu1 %v1171_v52 }
 0x335   : > { %1178 = vadd.xlane.f32.xlu0 %v1177_v61 }
 0x337   : > { %1208 = vadd.xlane.f32.xlu1 %v1207_v62 }
 0x339   : > { %1205 = vadd.xlane.f32.xlu0 %v1204_v1 }
 0x33d   : > { %1211 = vadd.xlane.f32.xlu0 %v1210_v6 }
 0x3b6   : > { %v1170_v8 = vpop.xlane.xlu0 %1169 }
 0x3b7   : > { %v1180_v11 = vadd.f32 %v1170_v8, %v1164_v14 }
 0x3b8   : > { %v1203_v12 = vpop.xlane.xlu1 %1202 }
 0x3b9   : > { %v1213_v15 = vadd.f32 %v1203_v12, %v1189_v7  ;;  %1185 = vst.msk [vmem:[#allocation4] sm:$0xff] %vm1184_vm7, %v1180_v11 }
 0x3ba   : > { %v1176_v51 = vpop.xlane.xlu0 %1175 }
 0x3bb   : > { %1217 = vst.msk [vmem:[#allocation5] sm:$0xff] %vm1184_vm7, %v1213_v15  ;;  %v1182_v19 = vadd.f32 %v1176_v51, %v1166_v30 }
 0x3bc   : > { %v1173_v26 = vpop.xlane.xlu1 %1172 }
 0x3bd   : > { %v1181_v22 = vadd.f32 %v1173_v26, %v1165_v18  ;;  %1187 = vst.msk [vmem:[#allocation4 + $0x10] sm:$0xff] %vm1184_vm7, %v1182_v19 }
 0x3be   : > { %v1179_v25 = vpop.xlane.xlu0 %1178 }
 0x3bf   : > { %1186 = vst.msk [vmem:[#allocation4 + $0x8] sm:$0xff] %vm1184_vm7, %v1181_v22  ;;  %v1183_v27 = vadd.f32 %v1179_v25, %v1167_v23 }
 0x3c0   : > { %v1209_v29 = vpop.xlane.xlu1 %1208 }
 0x3c1   : > { %v1215_v31 = vadd.f32 %v1209_v29, %v1191_v24  ;;  %1188 = vst.msk [vmem:[#allocation4 + $0x18] sm:$0xff] %vm1184_vm7, %v1183_v27 }
 0x3c2   : > { %v1206_v32 = vpop.xlane.xlu0 %1205 }
 0x3c3   : > { %1219 = vst.msk [vmem:[#allocation5 + $0x10] sm:$0xff] %vm1184_vm7, %v1215_v31  ;;  %v1214_v33 = vadd.f32 %v1206_v32, %v1190_v35 }
 0x3c5   : > { %1218 = vst.msk [vmem:[#allocation5 + $0x8] sm:$0xff] %vm1184_vm7, %v1214_v33 }
 0x3c6   : > { %v1212_v36 = vpop.xlane.xlu0 %1211 }
 0x3c7   : > { %v1216_v48 = vadd.f32 %v1212_v36, %v1192_v34 }
 0x3c9   : > { %1220 = vst.msk [vmem:[#allocation5 + $0x18] sm:$0xff] %vm1184_vm7, %v1216_v48 }
 0x3ca PF: > { %p1874_p7 = scmp.ne.s32.totalorder %s2048_s19, 2 }
 0x3cc   : > { %1229 = sbr.rel (%p1874_p7) target bundleno = 1400 (0x578), region = 80 }
 0x3d1   : > { %v1237_v37 = vld [vmem:[#allocation2 + $0x38] sm:$0xff]  ;;  %v2064_v39 = vmov 0   ;;  %v1235_v44 = vld [vmem:[#allocation2 + $0x28] sm:$0xff]  ;;  %v1236_v50 = vld [vmem:[#allocation2 + $0x30] sm:$0xff]  ;;  %vm1482_vm8 = vcmask 523264   ;;  %vm1788_vm9 = vcmp.lt.s32.totalorder %v426_v5, 256 }
 0x3d2   : > { %v1253_v38 = vld [vmem:[#allocation3 + $0x38] sm:$0xff]  ;;  %1981 = vset.pattern.permute.xlu1 %v2064_v39  ;;  %1980 = vset.pattern.permute.xlu0 %v2064_v39  ;;  %v2494_v42 = vmul.f32 0.005, %v1237_v37  ;;  %v1251_v45 = vld [vmem:[#allocation3 + $0x28] sm:$0xff]  ;;  %v2496_v58 = vmul.f32 0.005, %v1235_v44 }
 0x3d3   : > { %v1261_v43 = vmul.f32 0.005, %v1253_v38  ;;  %v1259_v49 = vmul.f32 0.005, %v1251_v45  ;;  %v2500_v28 = vmul.f32 0.005, %v1236_v50 }
 0x3d4   : > { %v1269_v13 = vmul.f32 %v2494_v42, %v2494_v42  ;;  %v1252_v52 = vld [vmem:[#allocation3 + $0x30] sm:$0xff]  ;;  %v1234_v55 = vld [vmem:[#allocation2 + $0x20] sm:$0xff]  ;;  %v1267_v56 = vmul.f32 %v2496_v58, %v2496_v58  ;;  %v1233_v4 = vld [vmem:[#allocation2 + $0x18] sm:$0xff] }
 0x3d5   : > { %v1260_v57 = vmul.f32 0.005, %v1252_v52  ;;  %v2504_v61 = vmul.f32 0.005, %v1234_v55  ;;  %v1250_v62 = vld [vmem:[#allocation3 + $0x20] sm:$0xff]  ;;  %v1268_v0 = vmul.f32 %v2500_v28, %v2500_v28  ;;  %v1249_v6 = vld [vmem:[#allocation3 + $0x18] sm:$0xff] }
 0x3d6   : > { %v1277_v63 = vsub.f32 %v1261_v43, %v1269_v13  ;;  %v1258_v1 = vmul.f32 0.005, %v1250_v62  ;;  %v1275_v14 = vsub.f32 %v1259_v49, %v1267_v56  ;;  %v2510_v8 = vmul.f32 0.005, %v1233_v4  ;;  %v1232_v30 = vld [vmem:[#allocation2 + $0x10] sm:$0xff]  ;;  %v1231_v27 = vld [vmem:[#allocation2 + $0x8] sm:$0xff] }
 0x3d7   : > { %v1266_v7 = vmul.f32 %v2504_v61, %v2504_v61  ;;  %v1257_v11 = vmul.f32 0.005, %v1249_v6  ;;  %v1276_v15 = vsub.f32 %v1260_v57, %v1268_v0  ;;  %v2514_v26 = vmul.f32 0.005, %v1232_v30  ;;  %v1248_v22 = vld [vmem:[#allocation3 + $0x10] sm:$0xff]  ;;  %v1247_v33 = vld [vmem:[#allocation3 + $0x8] sm:$0xff] }
 0x3d8   : > { %v1285_v12 = vmax.f32 %v1277_v63, 0.0  ;;  %v1283_v18 = vmax.f32 %v1275_v14, 0.0  ;;  %v1265_v19 = vmul.f32 %v2510_v8, %v2510_v8  ;;  %v1256_v25 = vmul.f32 0.005, %v1248_v22  ;;  %v1230_v43 = vld [vmem:[#allocation2] sm:$0xff]  ;;  %v1309_v4 = vld [vmem:[%s2713_s3 + $0x38] sm:$0xff] }
 0x3d9   : > { %v1274_v51 = vsub.f32 %v1258_v1, %v1266_v7  ;;  %v1284_v24 = vmax.f32 %v1276_v15, 0.0  ;;  %v1264_v32 = vmul.f32 %v2514_v26, %v2514_v26  ;;  %v2518_v36 = vmul.f32 0.005, %v1231_v27  ;;  %v1246_v44 = vld [vmem:[#allocation3] sm:$0xff]  ;;  %v1307_v6 = vld [vmem:[%s2713_s3 + $0x28] sm:$0xff] }
 0x3da   : > { %v1293_v23 = vadd.f32 1e-05, %v1285_v12  ;;  %v1291_v29 = vadd.f32 1e-05, %v1283_v18  ;;  %v1273_v35 = vsub.f32 %v1257_v11, %v1265_v19  ;;  %v1255_v48 = vmul.f32 0.005, %v1247_v33 }
 0x3db   : > { %v1282_v31 = vmax.f32 %v1274_v51, 0.0  ;;  %v1292_v34 = vadd.f32 1e-05, %v1284_v24  ;;  %v1272_v39 = vsub.f32 %v1256_v25, %v1264_v32  ;;  %v1263_v45 = vmul.f32 %v2518_v36, %v2518_v36  ;;  %v1592_v1 = vld [vmem:[#allocation4] sm:$0xff]  ;;  %v1308_v12 = vld [vmem:[%s2713_s3 + $0x30] sm:$0xff]  ;;  %v1593_v22 = vld [vmem:[#allocation4 + $0x8] sm:$0xff] }
 0x3dc   : > { %1982 = vrsqrt.f32 %v1293_v23  ;;  %v1281_v38 = vmax.f32 %v1273_v35, 0.0  ;;  %v2522_v49 = vmul.f32 0.005, %v1230_v43  ;;  %v1254_v50 = vmul.f32 0.005, %v1246_v44  ;;  %v1600_v30 = vld [vmem:[#allocation5] sm:$0xff] }
 0x3dd   : > { %1984 = vrsqrt.f32 %v1291_v29  ;;  %v1290_v37 = vadd.f32 1e-05, %v1282_v31  ;;  %v1271_v52 = vsub.f32 %v1255_v48, %v1263_v45  ;;  %v1280_v56 = vmax.f32 %v1272_v39, 0.0  ;;  %v1306_v19 = vld [vmem:[%s2713_s3 + $0x20] sm:$0xff]  ;;  %v1324_v32 = vld [vmem:[%s2714_s4 + $0x30] sm:$0xff]  ;;  %v1601_v39 = vld [vmem:[#allocation5 + $0x8] sm:$0xff] }
 0x3de   : > { %1986 = vrsqrt.f32 %v1292_v34  ;;  %v1289_v13 = vadd.f32 1e-05, %v1281_v38  ;;  %v1262_v55 = vmul.f32 %v2522_v49, %v2522_v49  ;;  %v2532_v7 = vmul.f32 0.005, %v1592_v1  ;;  %v1594_v34 = vld [vmem:[#allocation4 + $0x10] sm:$0xff]  ;;  %v1305_v38 = vld [vmem:[%s2713_s3 + $0x18] sm:$0xff] }
 0x3df   : > { %1988 = vrsqrt.f32 %v1290_v37  ;;  %v1279_v62 = vmax.f32 %v1271_v52, 0.0  ;;  %v1288_v63 = vadd.f32 1e-05, %v1280_v56  ;;  %v1604_v29 = vmul.f32 0.005, %v1600_v30  ;;  %v1304_v30 = vld [vmem:[%s2713_s3 + $0x10] sm:$0xff] }
 0x3e0   : > { %1990 = vrsqrt.f32 %v1289_v13  ;;  %v1270_v57 = vsub.f32 %v1254_v50, %v1262_v55  ;;  %v1608_v31 = vmul.f32 %v2532_v7, %v2532_v7  ;;  %v2545_v33 = vmul.f32 0.005, %v1593_v22  ;;  %v1602_v13 = vld [vmem:[#allocation5 + $0x10] sm:$0xff] }
 0x3e1   : > { %v1287_v14 = vadd.f32 1e-05, %v1279_v62  ;;  %1992 = vrsqrt.f32 %v1288_v63  ;;  %v2552_v50 = vmul.f32 0.005, %v1594_v34  ;;  %v1605_v56 = vmul.f32 0.005, %v1601_v39 }
 0x3e2   : > { %v1278_v0 = vmax.f32 %v1270_v57, 0.0  ;;  %v1612_v45 = vsub.f32 %v1604_v29, %v1608_v31  ;;  %v1609_v57 = vmul.f32 %v2545_v33, %v2545_v33  ;;  %v1595_v62 = vld [vmem:[#allocation4 + $0x18] sm:$0xff]  ;;  %v1606_v63 = vmul.f32 0.005, %v1602_v13  ;;  %v1320_v39 = vld [vmem:[%s2714_s4 + $0x10] sm:$0xff] }
 0x3e3   : > { %1994 = vrsqrt.f32 %v1287_v14  ;;  %v1322_v14 = vld [vmem:[%s2714_s4 + $0x20] sm:$0xff] }
 0x3e4   : > { %v1286_v15 = vadd.f32 1e-05, %v1278_v0  ;;  %v1616_v1 = vmax.f32 %v1612_v45, 0.0 }
 0x3e6   : > { %1996 = vrsqrt.f32 %v1286_v15 }
 0x3e9   : > { %v1983_v11 = vpop.eup %1982 }
 0x3ea   : > { %v1985_v18 = vpop.eup %1984  ;;  %v1317_v51 = vmul.f32 %v1983_v11, %v1309_v4  ;;  %v1610_v4 = vmul.f32 %v2552_v50, %v2552_v50  ;;  %v1613_v11 = vsub.f32 %v1605_v56, %v1609_v57  ;;  %v1318_v57 = vld [vmem:[%s2714_s4] sm:$0xff] }
 0x3eb   : > { %v1987_v23 = vpop.eup %1986  ;;  %v1315_v24 = vmul.f32 %v1985_v18, %v1307_v6  ;;  %v1603_v18 = vld [vmem:[#allocation5 + $0x18] sm:$0xff] }
 0x3ec   : > { %v1989_v25 = vpop.eup %1988  ;;  %1379 = vperm.xlu0 %1980, %v1317_v51   ;;  %v1316_v27 = vmul.f32 %v1987_v23, %v1308_v12  ;;  %v1333_v52 = vmul.f32 %v1317_v51, %v2494_v42  ;;  %v2569_v12 = vmul.f32 0.005, %v1595_v62  ;;  %v1614_v22 = vsub.f32 %v1606_v63, %v1610_v4  ;;  %v1460_v4 = vld [vmem:[%s2716_s6 + $0x10] sm:$0xff] }
 0x3ed   : > { %1369 = vperm.xlu1 %1981, %v1315_v24   ;;  %v1314_v35 = vmul.f32 %v1989_v25, %v1306_v19  ;;  %v1991_v48 = vpop.eup %1990  ;;  %v1331_v43 = vmul.f32 %v1315_v24, %v2496_v58  ;;  %v1325_v58 = vld [vmem:[%s2714_s4 + $0x38] sm:$0xff]  ;;  %v1620_v19 = vadd.f32 1e-05, %v1616_v1  ;;  %v1607_v29 = vmul.f32 0.005, %v1603_v18 }
 0x3ee   : > { %v1332_v37 = vmul.f32 %v1316_v27, %v2500_v28  ;;  %v1313_v55 = vmul.f32 %v1991_v48, %v1305_v38  ;;  %v1323_v28 = vld [vmem:[%s2714_s4 + $0x28] sm:$0xff]  ;;  %v1341_v6 = vsub.f32 %v1325_v58, %v1333_v52  ;;  %v1993_v15 = vpop.eup %1992  ;;  %v1321_v25 = vld [vmem:[%s2714_s4 + $0x18] sm:$0xff]  ;;  %v1611_v31 = vmul.f32 %v2569_v12, %v2569_v12 }
 0x3ef   : > { %v1339_v0 = vsub.f32 %v1323_v28, %v1331_v43  ;;  %v1330_v42 = vmul.f32 %v1314_v35, %v2504_v61  ;;  %v1312_v24 = vmul.f32 %v1993_v15, %v1304_v30  ;;  %1998 = vrsqrt.f32 %v1620_v19  ;;  %v1629_v15 = vld [vmem:[%s2717_s7 + $0x8] sm:$0xff]  ;;  %v1636_v19 = vld [vmem:[%s2718_s8] sm:$0xff] }
 0x3f0   : > { %1374 = vperm.xlu0 %1980, %v1316_v27   ;;  %v1340_v44 = vsub.f32 %v1324_v32, %v1332_v37  ;;  %v1329_v51 = vmul.f32 %v1313_v55, %v2510_v8  ;;  %v1995_v23 = vpop.eup %1994  ;;  %v1617_v27 = vmax.f32 %v1613_v11, 0.0  ;;  %v1303_v32 = vld [vmem:[%s2713_s3 + $0x8] sm:$0xff]  ;;  %v1302_v8 = vld [vmem:[%s2713_s3] sm:$0xff]  ;;  %v1618_v37 = vmax.f32 %v1614_v22, 0.0  ;;  %v1461_v11 = vld [vmem:[%s2716_s6 + $0x18] sm:$0xff] }
 0x3f1   : > { %1364 = vperm.xlu1 %1981, %v1314_v35   ;;  %v1338_v61 = vsub.f32 %v1322_v14, %v1330_v42  ;;  %v1328_v48 = vmul.f32 %v1312_v24, %v2514_v26  ;;  %v1311_v38 = vmul.f32 %v1995_v23, %v1303_v32  ;;  %v1615_v45 = vsub.f32 %v1607_v29, %v1611_v31  ;;  %v1319_v26 = vld [vmem:[%s2714_s4 + $0x8] sm:$0xff]  ;;  %v1628_v42 = vld [vmem:[%s2717_s7] sm:$0xff]  ;;  %v1631_v29 = vld [vmem:[%s2717_s7 + $0x18] sm:$0xff] }
 0x3f2   : > { %v1337_v34 = vsub.f32 %v1321_v25, %v1329_v51  ;;  %v2065_v1 = vmov 0.0   ;;  %v1637_v25 = vld [vmem:[%s2718_s8 + $0x8] sm:$0xff] }
 0x3f3   : > { %v1997_v35 = vpop.eup %1996  ;;  %v1336_v13 = vsub.f32 %v1320_v39, %v1328_v48  ;;  %v1327_v52 = vmul.f32 %v1311_v38, %v2518_v36  ;;  %v1619_v56 = vmax.f32 %v1615_v45, 0.0  ;;  %1559 = vmatprep.mubr.f32.mxu0 %v2065_v1  ;;  %1571 = vmatprep.mubr.f32.mxu1 %v2065_v1  ;;  %v1639_v48 = vld [vmem:[%s2718_s8 + $0x18] sm:$0xff]  ;;  %v1754_v39 = vld [vmem:[#allocation6] sm:$0x1] }
 0x3f4   : > { %1430 = vperm.xlu0 %1980, %v1340_v44   ;;  %v1310_v43 = vmul.f32 %v1997_v35, %v1302_v8  ;;  %v1621_v44 = vadd.f32 1e-05, %v1617_v27 }
 0x3f5   : > { %1359 = vperm.xlu1 %1981, %v1313_v55   ;;  %v1622_v55 = vadd.f32 1e-05, %v1618_v37  ;;  %v1335_v58 = vsub.f32 %v1319_v26, %v1327_v52  ;;  %v1623_v36 = vadd.f32 1e-05, %v1619_v56 }
 0x3f6   : > { %v1326_v28 = vmul.f32 %v1310_v43, %v2522_v49  ;;  %2000 = vrsqrt.f32 %v1621_v44  ;;  %v1459_v49 = vld [vmem:[%s2716_s6 + $0x8] sm:$0xff] }
 0x3f7   : > { %2002 = vrsqrt.f32 %v1622_v55 }
 0x3f8   : > { %1425 = vperm.xlu0 %1980, %v1339_v0   ;;  %v1334_v62 = vsub.f32 %v1318_v57, %v1326_v28  ;;  %v1458_v0 = vld [vmem:[%s2716_s6] sm:$0xff]  ;;  %2004 = vrsqrt.f32 %v1623_v36 }
 0x3f9   : > { %1435 = vperm.xlu1 %1981, %v1341_v6  }
 0x3fc   : > { %1420 = vperm.xlu0 %1980, %v1338_v61   ;;  %v1999_v63 = vpop.eup %1998  ;;  %v1630_v61 = vld [vmem:[%s2717_s7 + $0x10] sm:$0xff] }
 0x3fd   : > { %1354 = vperm.xlu1 %1981, %v1312_v24   ;;  %v1632_v6 = vmul.f32 %v1999_v63, %v1628_v42 }
 0x3ff   : > { %v1640_v51 = vmul.f32 %v1632_v6, %v2532_v7 }
 0x400   : > { %1415 = vperm.xlu0 %1980, %v1337_v34   ;;  %v1704_v34 = vld [vmem:[%s2719_s9] sm:$0xff] }
 0x401   : > { %1349 = vperm.xlu1 %1981, %v1311_v38   ;;  %v1644_v24 = vsub.f32 %v1636_v19, %v1640_v51  ;;  %v1707_v38 = vld [vmem:[%s2719_s9 + $0x18] sm:$0xff] }
 0x403   : > { %v2001_v14 = vpop.eup %2000 }
 0x404   : > { %1410 = vperm.xlu0 %1980, %v1336_v13   ;;  %v2003_v30 = vpop.eup %2002  ;;  %v1633_v18 = vmul.f32 %v2001_v14, %v1629_v15 }
 0x405   : > { %1344 = vperm.xlu1 %1981, %v1310_v43   ;;  %v1634_v22 = vmul.f32 %v2003_v30, %v1630_v61  ;;  %v2005_v27 = vpop.eup %2004 }
 0x406   : > { %v1641_v23 = vmul.f32 %v1633_v18, %v2545_v33  ;;  %v1635_v35 = vmul.f32 %v2005_v27, %v1631_v29  ;;  %v1638_v33 = vld [vmem:[%s2718_s8 + $0x10] sm:$0xff] }
 0x407   : > { %v1642_v31 = vmul.f32 %v1634_v22, %v2552_v50  ;;  %v1705_v50 = vld [vmem:[%s2719_s9 + $0x8] sm:$0xff] }
 0x408   : > { %1405 = vperm.xlu0 %1980, %v1335_v58   ;;  %v1645_v7 = vsub.f32 %v1637_v25, %v1641_v23  ;;  %v1643_v8 = vmul.f32 %v1635_v35, %v2569_v12  ;;  %v1706_v12 = vld [vmem:[%s2719_s9 + $0x10] sm:$0xff] }
 0x409   : > { %1400 = vperm.xlu1 %1981, %v1334_v62   ;;  %v1646_v32 = vsub.f32 %v1638_v33, %v1642_v31 }
 0x40a   : > { %v1647_v37 = vsub.f32 %v1639_v48, %v1643_v8 }
 0x40c   : > { %1464 = vperm.xlu0 %1980, %v1458_v0  }
 0x40d   : > { %1469 = vperm.xlu1 %1981, %v1459_v49  }
 0x410   : > { %1474 = vperm.xlu0 %1980, %v1460_v4  }
 0x411   : > { %1479 = vperm.xlu1 %1981, %v1461_v11  }
 0x414   : > { %1650 = vperm.xlu0 %1980, %v1632_v6  }
 0x415   : > { %1655 = vperm.xlu1 %1981, %v1633_v18  }
 0x418   : > { %1660 = vperm.xlu0 %1980, %v1634_v22  }
 0x419   : > { %1678 = vperm.xlu1 %1981, %v1644_v24  }
 0x41c   : > { %1683 = vperm.xlu0 %1980, %v1645_v7  }
 0x41d   : > { %1665 = vperm.xlu1 %1981, %v1635_v35  }
 0x420   : > { %1688 = vperm.xlu0 %1980, %v1646_v32  }
 0x421   : > { %1710 = vperm.xlu1 %1981, %v1704_v34  }
 0x424   : > { %1715 = vperm.xlu0 %1980, %v1705_v50  }
 0x425   : > { %1693 = vperm.xlu1 %1981, %v1647_v37  }
 0x428   : > { %1720 = vperm.xlu0 %1980, %v1706_v12  }
 0x429   : > { %1725 = vperm.xlu1 %1981, %v1707_v38  }
 0x42c   : > { %1757 = vperm.xlu0 %1980, %v1754_v39  }
 0x467   : > { %v1380_v43 = vpop.permute.xlu0 %1379 }
 0x468   : > { %v1370_v44 = vpop.permute.xlu1 %1369  ;;  %v1396_v26 = vmul.f32 %v1380_v43, %v2274_v17  ;;  %v1397_v28 = vmul.f32 %v1380_v43, %v2278_v21 }
 0x469   : > { %v1393_v0 = vmul.f32 %v1370_v44, %v2262_v60  ;;  %v1392_v4 = vmul.f32 %v1370_v44, %v2258_v54 }
 0x46b   : > { %v1375_v45 = vpop.permute.xlu0 %1374 }
 0x46c   : > { %v1365_v13 = vpop.permute.xlu1 %1364  ;;  %v1395_v58 = vmul.f32 %v1375_v45, %v2270_v10  ;;  %v1394_v63 = vmul.f32 %v1375_v45, %v2266_v3 }
 0x46d   : > { %v1390_v21 = vmul.f32 %v1365_v13, %v2250_v41  ;;  %v1391_v10 = vmul.f32 %v1365_v13, %v2254_v47 }
 0x46f   : > { %v1431_v52 = vpop.permute.xlu0 %1430 }
 0x470   : > { %v1360_v55 = vpop.permute.xlu1 %1359  ;;  %v1451_v49 = vadd.f32 %v1431_v52, %v1395_v58  ;;  %v1450_v6 = vadd.f32 %v1431_v52, %v1394_v63 }
 0x471   : > { %v1388_v3 = vmul.f32 %v1360_v55, %v2272_v16  ;;  %v1389_v60 = vmul.f32 %v1360_v55, %v2276_v20 }
 0x473   : > { %v1426_v56 = vpop.permute.xlu0 %1425 }
 0x474   : > { %v1436_v57 = vpop.permute.xlu1 %1435  ;;  %v1449_v14 = vadd.f32 %v1426_v56, %v1393_v0  ;;  %v1448_v11 = vadd.f32 %v1426_v56, %v1392_v4 }
 0x475   : > { %v1453_v62 = vadd.f32 %v1436_v57, %v1397_v28  ;;  %v1452_v36 = vadd.f32 %v1436_v57, %v1396_v26 }
 0x477   : > { %1511 = vmatprep.subr.mxu0 %v1453_v62  ;;  %1904 = vmatprep.subr.mxu1 %v1453_v62  ;;  %v1421_v42 = vpop.permute.xlu0 %1420 }
 0x478   : > { %1512 = vmatpush1.msra.mxu0 %v1452_v36  ;;  %1912 = vmatpush1.msra.mxu1 %v1452_v36  ;;  %v1355_v17 = vpop.permute.xlu1 %1354  ;;  %v1447_v15 = vadd.f32 %v1421_v42, %v1391_v10  ;;  %v1446_v30 = vadd.f32 %v1421_v42, %v1390_v21 }
 0x479   : > { %1513 = vmatprep.subr.mxu0 %v1451_v49  ;;  %1905 = vmatprep.subr.mxu1 %v1451_v49  ;;  %v1386_v61 = vmul.f32 %v1355_v17, %v2264_v2  ;;  %v1387_v16 = vmul.f32 %v1355_v17, %v2268_v9 }
 0x47a   : > { %1514 = vmatpush1.msra.mxu0 %v1450_v6  ;;  %1913 = vmatpush1.msra.mxu1 %v1450_v6 }
 0x47b   : > { %1515 = vmatprep.subr.mxu0 %v1449_v14  ;;  %1906 = vmatprep.subr.mxu1 %v1449_v14  ;;  %v1416_v54 = vpop.permute.xlu0 %1415 }
 0x47c   : > { %1516 = vmatpush1.msra.mxu0 %v1448_v11  ;;  %1914 = vmatpush1.msra.mxu1 %v1448_v11  ;;  %v1444_v41 = vadd.f32 %v1416_v54, %v1388_v3  ;;  %v1445_v18 = vadd.f32 %v1416_v54, %v1389_v60  ;;  %v1350_v47 = vpop.permute.xlu1 %1349 }
 0x47d   : > { %1517 = vmatprep.subr.mxu0 %v1447_v15  ;;  %1907 = vmatprep.subr.mxu1 %v1447_v15  ;;  %v1384_v23 = vmul.f32 %v1350_v47, %v2256_v53  ;;  %v1385_v24 = vmul.f32 %v1350_v47, %v2260_v59  ;;  %v1454_v53 = vld [vmem:[%s2715_s5] sm:$0xff]  ;;  %v1457_v59 = vld [vmem:[%s2715_s5 + $0x18] sm:$0xff] }
 0x47e   : > { %1518 = vmatpush1.msra.mxu0 %v1446_v30  ;;  %1915 = vmatpush1.msra.mxu1 %v1446_v30 }
 0x47f   : > { %1519 = vmatprep.subr.mxu0 %v1445_v18  ;;  %1908 = vmatprep.subr.mxu1 %v1445_v18  ;;  %v1411_v20 = vpop.permute.xlu0 %1410 }
 0x480   : > { %1520 = vmatpush1.msra.mxu0 %v1444_v41  ;;  %1916 = vmatpush1.msra.mxu1 %v1444_v41  ;;  %v1442_v51 = vadd.f32 %v1411_v20, %v1386_v61  ;;  %v1443_v19 = vadd.f32 %v1411_v20, %v1387_v16  ;;  %v1345_v22 = vpop.permute.xlu1 %1344 }
 0x481   : > { %v1383_v9 = vmul.f32 %v1345_v22, %v2252_v46  ;;  %v1382_v7 = vmul.f32 %v1345_v22, %v2248_v40  ;;  %v1456_v46 = vld [vmem:[%s2715_s5 + $0x10] sm:$0xff]  ;;  %v1455_v40 = vld [vmem:[%s2715_s5 + $0x8] sm:$0xff] }
 0x482   : > { %1521 = vmatprep.subr.mxu0 %v1443_v19  ;;  %1909 = vmatprep.subr.mxu1 %v1443_v19 }
 0x483   : > { %1522 = vmatpush1.msra.mxu0 %v1442_v51  ;;  %1917 = vmatpush1.msra.mxu1 %v1442_v51  ;;  %v1406_v2 = vpop.permute.xlu0 %1405 }
 0x484   : > { %v1440_v25 = vadd.f32 %v1406_v2, %v1384_v23  ;;  %v1441_v27 = vadd.f32 %v1406_v2, %v1385_v24  ;;  %v1401_v29 = vpop.permute.xlu1 %1400 }
 0x485   : > { %v1439_v31 = vadd.f32 %v1401_v29, %v1383_v9  ;;  %v1438_v35 = vadd.f32 %v1401_v29, %v1382_v7 }
 0x486   : > { %1523 = vmatprep.subr.mxu0 %v1441_v27  ;;  %1910 = vmatprep.subr.mxu1 %v1441_v27 }
 0x487   : > { %1524 = vmatpush1.msra.mxu0 %v1440_v25  ;;  %1918 = vmatpush1.msra.mxu1 %v1440_v25  ;;  %v1465_v33 = vpop.permute.xlu0 %1464 }
 0x488   : > { %1525 = vmatprep.subr.mxu0 %v1439_v31  ;;  %1911 = vmatprep.subr.mxu1 %v1439_v31  ;;  %v1470_v32 = vpop.permute.xlu1 %1469 }
 0x489   : > { %1526 = vmatpush1.msra.mxu0 %v1438_v35  ;;  %1919 = vmatpush1.msra.mxu1 %v1438_v35 }
 0x48a   : > { %1875 = vmatmul.mubr.msk.f32.vlgmr.msra.gmra.mxu0 %vm1482_vm8, %v1454_v53  ;;  %1877 = vmatmul.mubr.msk.f32.vlgmr.msra.gmra.mxu1 %vm1482_vm8, %v1456_v46 }
 0x48b   : > { %1565 = vmatprep.mubr.f32.mxu0 %v2065_v1  ;;  %1577 = vmatprep.mubr.f32.mxu1 %v2065_v1  ;;  %v1475_v8 = vpop.permute.xlu0 %1474 }
 0x48c   : > { %v1480_v34 = vpop.permute.xlu1 %1479 }
 0x48e   : > { %1876 = vmatmul.mubr.msk.f32.gmra.mxu0 %vm1482_vm8, %v1455_v40  ;;  %1878 = vmatmul.mubr.msk.f32.gmra.mxu1 %vm1482_vm8, %v1457_v59 }
 0x48f   : > { %v1651_v48 = vpop.permute.xlu0 %1650 }
 0x490   : > { %v1656_v50 = vpop.permute.xlu1 %1655 }
 0x493   : > { %v1661_v37 = vpop.permute.xlu0 %1660 }
 0x494   : > { %v1679_v12 = vpop.permute.xlu1 %1678 }
 0x497   : > { %v1684_v38 = vpop.permute.xlu0 %1683 }
 0x498   : > { %v1666_v1 = vpop.permute.xlu1 %1665 }
 0x49b   : > { %v1689_v44 = vpop.permute.xlu0 %1688 }
 0x49c   : > { %v1711_v36 = vpop.permute.xlu1 %1710 }
 0x49f   : > { %v1716_v14 = vpop.permute.xlu0 %1715 }
 0x4a0   : > { %v1694_v16 = vpop.permute.xlu1 %1693 }
 0x4a3   : > { %v1721_v2 = vpop.permute.xlu0 %1720 }
 0x4a4   : > { %v1726_v40 = vpop.permute.xlu1 %1725 }
 0x54a   : > { %v1561_v39 = vpop.f32.mrf.mxu0  ;;  %v1573_v43 = vpop.f32.mrf.mxu1 }
 0x54b   : > { %v1562_v45 = vadd.f32 %v1561_v39, %v1465_v33  ;;  %v1574_v13 = vadd.f32 %v1573_v43, %v1475_v8 }
 0x54c   : > { %v1563_v52 = vpop.f32.mrf.mxu0  ;;  %v1575_v55 = vpop.f32.mrf.mxu1 }
 0x54d   : > { %v1584_v26 = vmax.f32 %v1562_v45, 0.0  ;;  %v1588_v28 = vmax.f32 %v1574_v13, 0.0  ;;  %v1564_v56 = vadd.f32 %v1563_v52, %v1465_v33  ;;  %v1576_v57 = vadd.f32 %v1575_v55, %v1475_v8  ;;  %v1758_v55 = vpop.permute.xlu0 %1757 }
 0x54e   : > { %v1567_v58 = vpop.f32.mrf.mxu0  ;;  %v1579_v62 = vpop.f32.mrf.mxu1 }
 0x54f   : > { %v1668_v63 = vmul.f32 %v1651_v48, %v1584_v26  ;;  %v1585_v0 = vmax.f32 %v1564_v56, 0.0  ;;  %v1589_v49 = vmax.f32 %v1576_v57, 0.0  ;;  %v1568_v42 = vadd.f32 %v1567_v58, %v1470_v32 }
 0x550   : > { %v1580_v4 = vadd.f32 %v1579_v62, %v1480_v34  ;;  %v1569_v6 = vpop.f32.mrf.mxu0  ;;  %v1581_v17 = vpop.f32.mrf.mxu1  ;;  %v1672_v21 = vmul.f32 %v1661_v37, %v1588_v28  ;;  %v2066_v26 = vmov 1966171168  }
 0x551   : > { %v1669_v10 = vmul.f32 %v1651_v48, %v1585_v0  ;;  %v1586_v3 = vmax.f32 %v1568_v42, 0.0  ;;  %v1570_v11 = vadd.f32 %v1569_v6, %v1470_v32  ;;  %v1582_v15 = vadd.f32 %v1581_v17, %v1480_v34 }
 0x552   : > { %v1590_v60 = vmax.f32 %v1580_v4, 0.0  ;;  %v1696_v54 = vadd.f32 %v1679_v12, %v1668_v63  ;;  %v1673_v30 = vmul.f32 %v1661_v37, %v1589_v49  ;;  %v1700_v20 = vadd.f32 %v1689_v44, %v1672_v21 }
 0x553   : > { %v1670_v41 = vmul.f32 %v1656_v50, %v1586_v3  ;;  %v1587_v47 = vmax.f32 %v1570_v11, 0.0  ;;  %v1591_v61 = vmax.f32 %v1582_v15, 0.0  ;;  %v1697_v51 = vadd.f32 %v1679_v12, %v1669_v10 }
 0x554   : > { %v1674_v18 = vmul.f32 %v1666_v1, %v1590_v60  ;;  %v1728_v24 = vmul.f32 %v1711_v36, %v1696_v54  ;;  %v1701_v9 = vadd.f32 %v1689_v44, %v1673_v30  ;;  %v1732_v7 = vmul.f32 %v1721_v2, %v1700_v20 }
 0x555   : > { %v1698_v19 = vadd.f32 %v1684_v38, %v1670_v41  ;;  %v1671_v22 = vmul.f32 %v1656_v50, %v1587_v47  ;;  %v1675_v23 = vmul.f32 %v1666_v1, %v1591_v61  ;;  %v1729_v31 = vmul.f32 %v1711_v36, %v1697_v51 }
 0x556   : > { %v1702_v27 = vadd.f32 %v1694_v16, %v1674_v18  ;;  %v1733_v59 = vmul.f32 %v1721_v2, %v1701_v9  ;;  %v1761_v1 = vshrl.u32 %v426_v5, 7  ;;  %v1772_v28 = vunpack.c.l.s4 %v2066_v26 }
 0x557   : > { %v1730_v25 = vmul.f32 %v1716_v14, %v1698_v19  ;;  %v1699_v29 = vadd.f32 %v1684_v38, %v1671_v22  ;;  %v1703_v46 = vadd.f32 %v1694_v16, %v1675_v23 }
 0x558   : > { %v1734_v33 = vmul.f32 %v1726_v40, %v1702_v27  ;;  %v1762_v45 = vsub.s32 0, %v1761_v1  ;;  %v1773_v63 = vunpack.c.0.s8 %v1772_v28 }
 0x559   : > { %v1736_v35 = vadd.f32 %v1730_v25, %v1728_v24  ;;  %v1731_v53 = vmul.f32 %v1716_v14, %v1699_v29  ;;  %v1735_v48 = vmul.f32 %v1726_v40, %v1703_v46 }
 0x55a   : > { %v1763_v58 = vrot.slane %v1758_v55, %v1762_v45  ;;  %v1776_v4 = vsub.s32 %v1773_v63, %v1761_v1 }
 0x55b   : > { %v1737_v32 = vadd.f32 %v1736_v35, %v1732_v7  ;;  %v1745_v8 = vadd.f32 %v1731_v53, %v1729_v31 }
 0x55d   : > { %v1738_v34 = vadd.f32 %v1737_v32, %v1734_v33  ;;  %v1746_v50 = vadd.f32 %v1745_v8, %v1733_v59 }
 0x55f   : > { %v1739_v37 = vrot.slane %v1738_v34, 4  ;;  %v1747_v12 = vadd.f32 %v1746_v50, %v1735_v48 }
 0x561   : > { %v1740_v39 = vadd.f32 %v1739_v37, %v1738_v34  ;;  %v1748_v43 = vrot.slane %v1747_v12, 4 }
 0x563   : > { %v1741_v38 = vrot.slane %v1740_v39, 2  ;;  %v1749_v44 = vadd.f32 %v1748_v43, %v1747_v12 }
 0x565   : > { %v1742_v13 = vadd.f32 %v1741_v38, %v1740_v39  ;;  %v1750_v52 = vrot.slane %v1749_v44, 2 }
 0x567   : > { %v1743_v56 = vrot.slane %v1742_v13, 1  ;;  %v1751_v57 = vadd.f32 %v1750_v52, %v1749_v44 }
 0x569   : > { %v1744_v62 = vadd.f32 %v1743_v56, %v1742_v13  ;;  %v1752_v36 = vrot.slane %v1751_v57, 1 }
 0x56b   : > { %v1764_v0 = vadd.f32 %v1763_v58, %v1744_v62  ;;  %v1753_v49 = vadd.f32 %v1752_v36, %v1751_v57 }
 0x56d   : > { %v1765_v42 = vadd.f32 %v1763_v58, %v1753_v49  ;;  %v1766_v6 = vmax.f32 %v1764_v0, 0.0 }
 0x56f   : > { %v1767_v17 = vmax.f32 %v1765_v42, 0.0 }
 0x571   : > { %v1770_v21 = vcombine.low %v1766_v6, %v1767_v17 }
 0x573   : > { %v1777_v10 = vrot.slane %v1770_v21, %v1776_v4 }
 0x575   : > { %v1784_v14 = vrot.slane %v1777_v10, %v1776_v4 }
 0x577   : > { %1790 = vst.msk [vmem:[#allocation7] sm:$0x3] %vm1788_vm9, %v1784_v14 }
 0x578 PF: > { %p2686_p8 = scmp.eq.s32.totalorder %s1854_s10, 2  ;;  %s2067_s29 = smov [#allocation7]  }
 0x579   : > { %s1801_s30 = sshll.u32 %s2067_s29, 4  ;;  %s1802_s30 = int_to_ptr.vmem [resolvable:$true] %s1801_s30 }
 0x57a   : > { %s2006_s12 = scalar_lea.vmem %s1802_s30, 32  ;;  %p2013_p12 = scmp.lt.s32.totalorder %s1802_s30, %s1802_s30 }
 0x57b   : > { %p2007_p9 = scmp.ne.s32.totalorder %s1802_s30, %s2006_s12  ;;  %p2014_p13 = scmp.lt.s32.totalorder %s2006_s12, %s2006_s12 }
 0x57d   : > { %p2008_p10 = pnand %p2007_p9, %p2686_p8  ;;  %p2015_p0 = por %p2014_p13, %p2013_p12 }
 0x57f   : > { %p2009_p11 = pneg %p2008_p10 }
 0x581   : > { %p2016_p1 = pnand %p2015_p0, %p2009_p11 }
 0x583   : > { %2019 = shalt.err (!%p2016_p1)
}
 0x584   : > { %1921 = dma.vmem_to_hbm [thread:$0]  (%p2686_p8), %s1802_s30, 32, %s2721_s11, [#allocation8]  }
 0x585   : > { %2043 = dma.done.wait (%p2686_p8), [#allocation8], 32  }
 0x586   : > { %2045 = vsyncadd (%p2686_p8), [#allocation8], 4294967264 }
 0x587 PF: > { %s24_s21 = sadd.s32 1, %s2056_s21   ;;  %s2723_s19 = smov %s2052_s20 }
 0x588   : > { %p21_p2 = scmp.ge.s32.totalorder %s24_s21, 5   ;;  %s2724_s20 = smov %s2726_s22 }
 0x58a   :  { %23 = sbr.rel (!%p21_p2) target bundleno = 5 (0x5), region = 108 }
 0x58f   :  { %1814 = vsyncpa [#allocation8], 1 }
 0x590   :  { %1816 = vsyncpa [#allocation8 + $0x1], 1 }

</bundles_post_ra>
